<compile_context>
chip_gen: v7x
topology: tpu7x:2x2x1
jax: 0.10.0
libtpu: 0.0.40
codegen_flags: <defaults>
</compile_context>

<pallas_src>
import functools

import jax
import jax.numpy as jnp
from jax import lax
from jax.experimental import pallas as pl
from jax.experimental.pallas import tpu as pltpu


# Row indices inside the packed per-layer vector block (L, 16, D).
_LN1_W, _LN1_B, _LN2_W, _LN2_B = 0, 1, 2, 3
_U, _W, _MR, _MK, _MV, _TBO, _CMR, _CMK = 4, 5, 6, 7, 8, 9, 10, 11
_N_VEC_ROWS = 16                       # 12 used rows, padded to a sublane multiple

# Slice indices inside the packed per-layer weight block (L, 7, D, D).
_TWK, _TWV, _TWR, _TWO, _CWK, _CWV, _CWR = range(7)

# Row indices inside the packed model-level vector block (8, D).
_LNI_W, _LNI_B, _LNO_W, _LNO_B = 0, 1, 2, 3

_VEC_ORDER = ["ln1_w", "ln1_b", "ln2_w", "ln2_b",
              "u", "w", "mr", "mk", "mv", "tbo", "cmr", "cmk"]
_MAT_ORDER = ["tWk", "tWv", "tWr", "tWo", "cWk", "cWv", "cWr"]


# ----------------------------------------------------------------------------
# Kernel helpers
# ----------------------------------------------------------------------------
def _ln(x, w, b):
    """LayerNorm over last dim (eps=1e-5, biased variance) - matches torch."""
    m = jnp.mean(x, axis=-1, keepdims=True)
    v = jnp.mean((x - m) ** 2, axis=-1, keepdims=True)
    return (x - m) * lax.rsqrt(v + 1e-5) * w + b


# ----------------------------------------------------------------------------
# Fused whole-model kernel (grid axis = layer)
# ----------------------------------------------------------------------------
def rwkv_stack_kernel(x_ref, mvec_ref, lvec_ref, lmat_ref, o_ref,
                      e1_sc, k_sc, v_sc, *, roll_mode):
    T, B, D = k_sc.shape
    TB = T * B
    l = pl.program_id(0)
    n_layers = pl.num_programs(0)

    # Layer 0: apply the model-level input LayerNorm, seed the resident act.
    @pl.when(l == 0)
    def _():
        o_ref[...] = _ln(x_ref[...], mvec_ref[_LNI_W:_LNI_W + 1, :],
                         mvec_ref[_LNI_B:_LNI_B + 1, :])

    x = o_ref[...]                                    # (TB, D) f32, resident

    if roll_mode != 0:
        # Rows belonging to time-step 0 (first B rows) must become zero.
        row_ok = lax.broadcasted_iota(jnp.int32, (TB, D), 0) >= B
        roll_amt = B if roll_mode == 1 else TB - B

    def shift(z):
        # time_shift == ZeroPad2d((0,0,1,-1)) on time-major rows: prepend B
        # zero rows (one zero time-step), drop the last time-step.
        if roll_mode == 0:
            # Fallback: sublane roll unavailable on this build.
            return jnp.concatenate([jnp.zeros((B, D), z.dtype), z[: TB - B]],
                                   axis=0)
        return jnp.where(row_ok, pltpu.roll(z, shift=roll_amt, axis=0), 0.0)

    def vrow(i):                                      # packed (1, D) vector row
        return lvec_ref[i:i + 1, :]

    def matmul(z, wi):
        # bf16 MXU matmul, f32 accumulation; weight slab wi of (7, D, D) pack.
        return jnp.dot(z.astype(jnp.bfloat16), lmat_ref[wi],
                       preferred_element_type=jnp.float32)

    # ------------------------------ TimeMixing ------------------------------
    x1 = _ln(x, vrow(_LN1_W), vrow(_LN1_B))
    xs = shift(x1)
    d = x1 - xs                                       # shared by all 3 blends

    k = matmul(xs + d * vrow(_MK), _TWK)
    v = matmul(xs + d * vrow(_MV), _TWV)
    # NB: sigmoid applied BEFORE the receptance projection, per the reference.
    r = matmul(jax.nn.sigmoid(xs + d * vrow(_MR)), _TWR)

    # Hoisted (vectorized) exp/max of the WKV recurrence: the serial loop
    # below carries only a/b with 4 FMAs per step on the critical path.
    u = vrow(_U)
    w = vrow(_W)
    q = jnp.maximum(u + k, w)
    e2 = jnp.exp(u + k - q)
    e1_sc[...] = jnp.exp(-w - q).reshape(T, B, D)
    k_sc[...] = e2.reshape(T, B, D)                   # e2   -> b history
    v_sc[...] = (e2 * v).reshape(T, B, D)             # e2*v -> a history

    def wkv_step(i, carry):
        a, b = carry                                  # register-carried state
        e1_i = e1_sc[i]
        a = e1_i * a + v_sc[i]
        b = e1_i * b + k_sc[i]
        v_sc[i] = a                                   # reuse buffers in place
        k_sc[i] = b
        return a, b

    zero = jnp.zeros((B, D), jnp.float32)
    lax.fori_loop(0, T, wkv_step, (zero, zero), unroll=min(T, 8))

    # Exact division, vectorized once (off the serial critical path).
    wkv = v_sc[...].reshape(TB, D) / k_sc[...].reshape(TB, D)
    attention = matmul(wkv * r, _TWO) + vrow(_TBO)
    x2 = x + attention

    # ---------------------------- ChannelMixing -----------------------------
    xc = _ln(x2, vrow(_LN2_W), vrow(_LN2_B))
    xcs = shift(xc)
    dc = xc - xcs

    ck = matmul(xcs + dc * vrow(_CMK), _CWK)
    ck = jnp.square(jnp.maximum(ck, 0.0))             # square(relu(key(k)))
    cv = matmul(ck, _CWV)
    cr = jax.nn.sigmoid(matmul(xcs + dc * vrow(_CMR), _CWR))

    y = x2 + cr * cv

    @pl.when(l < n_layers - 1)
    def _():
        o_ref[...] = y

    # Last layer: apply the model-level output LayerNorm in place.
    @pl.when(l == n_layers - 1)
    def _():
        o_ref[...] = _ln(y, mvec_ref[_LNO_W:_LNO_W + 1, :],
                         mvec_ref[_LNO_B:_LNO_B + 1, :])


# ----------------------------------------------------------------------------
# Parameter packing
# ----------------------------------------------------------------------------
def stack_params(blocks):
    """Pack per-layer params: vectors -> (L,16,D) f32, weights -> (L,7,D,D) bf16."""
    D = blocks[0]["tWk"].shape[0]
    pad = jnp.zeros((_N_VEC_ROWS - len(_VEC_ORDER), D), jnp.float32)
    lvecs = jnp.stack(
        [jnp.concatenate([bp[n] for n in _VEC_ORDER] + [pad], axis=0)
         for bp in blocks], axis=0)
    lmats = jnp.stack(
        [jnp.stack([bp[n] for n in _MAT_ORDER], axis=0) for bp in blocks],
        axis=0).astype(jnp.bfloat16)
    return {"lvecs": lvecs, "lmats": lmats}


# ----------------------------------------------------------------------------
# Wrapper
# ----------------------------------------------------------------------------
def pallas_forward(tokens, params, stacked, *, roll_mode=1):
    emb = params["emb"]
    B, T = tokens.shape
    D = emb.shape[1]
    TB = T * B
    L = stacked["lvecs"].shape[0]

    # Embedding gather is glue (plain JAX); everything else runs in Pallas.
    x = emb[tokens]                                    # (B, T, D)
    x2d = jnp.transpose(x, (1, 0, 2)).reshape(TB, D)   # time-major 2-D layout

    # Pack the 4 model-level LayerNorm vectors into one (8, D) block (1 DMA).
    mvecs = jnp.concatenate(
        [params["ln_in_w"], params["ln_in_b"],
         params["ln_out_w"], params["ln_out_b"],
         jnp.zeros((4, D), jnp.float32)], axis=0)

    act_spec = pl.BlockSpec((TB, D), lambda l: (0, 0))
    mvec_spec = pl.BlockSpec((8, D), lambda l: (0, 0))
    lvec_spec = pl.BlockSpec((None, _N_VEC_ROWS, D), lambda l: (l, 0, 0))
    lmat_spec = pl.BlockSpec((None, 7, D, D), lambda l: (l, 0, 0, 0))

    # VMEM budget from actual buffer sizes (double-buffered layer blocks,
    # resident activation, sublane-padded scratch) plus headroom.
    weight_bytes = 2 * 7 * D * D * 2
    vec_bytes = 2 * _N_VEC_ROWS * D * 4 + 8 * D * 4
    act_bytes = 2 * TB * D * 4
    scratch_bytes = 3 * T * max(B, 8) * D * 4
    need = weight_bytes + vec_bytes + act_bytes + scratch_bytes
    vmem_limit = min(max(int(1.5 * need) + (4 << 20), 32 << 20), 96 << 20)
    # TODO(synk): for v7x (64 MiB VMEM/TC) at production D, tile N over the
    # DxD matmuls instead of raising the limit, and split batch over cores.

    cost = pl.CostEstimate(
        flops=int(L * (7 * 2 * TB * D * D + 50 * TB * D)),
        transcendentals=int(L * 5 * TB * D),
        bytes_accessed=int(2 * TB * D * 4 + 8 * D * 4
                           + L * (7 * D * D * 2 + _N_VEC_ROWS * D * 4)),
    )

    out2d = pl.pallas_call(
        functools.partial(rwkv_stack_kernel, roll_mode=roll_mode),
        out_shape=jax.ShapeDtypeStruct((TB, D), jnp.float32),
        grid_spec=pltpu.PrefetchScalarGridSpec(
            num_scalar_prefetch=0,
            grid=(L,),
            in_specs=[act_spec, mvec_spec, lvec_spec, lmat_spec],
            out_specs=act_spec,
            scratch_shapes=[
                pltpu.VMEM((T, B, D), jnp.float32),   # e1
                pltpu.VMEM((T, B, D), jnp.float32),   # e2   -> b history
                pltpu.VMEM((T, B, D), jnp.float32),   # e2*v -> a history
            ],
        ),
        compiler_params=pltpu.CompilerParams(
            dimension_semantics=("arbitrary",),       # layer l+1 depends on l
            vmem_limit_bytes=vmem_limit,
        ),
        cost_estimate=cost,
    )(x2d, mvecs, stacked["lvecs"], stacked["lmats"])

    return out2d.reshape(T, B, D).transpose(1, 0, 2)   # back to (B, T, D)


# ----------------------------------------------------------------------------
# Roll-convention probe (one tiny compile; guarantees the time-shift is exact)
# ----------------------------------------------------------------------------
def probe_roll_convention():
    """+1 if pltpu.roll matches jnp.roll (result[i] = x[i - shift]) along
    sublanes, -1 if reversed, 0 if sublane roll is unavailable (fallback)."""
    try:
        def k(o_ref):
            o_ref[...] = pltpu.roll(
                lax.broadcasted_iota(jnp.float32, (8, 128), 0), shift=1, axis=0)
        out = jax.block_until_ready(pl.pallas_call(
            k, out_shape=jax.ShapeDtypeStruct((8, 128), jnp.float32))())
        col = [int(out[i, 0]) for i in range(8)]
        if col == [7, 0, 1, 2, 3, 4, 5, 6]:
            return 1
        if col == [1, 2, 3, 4, 5, 6, 7, 0]:
            return -1
    except Exception:
        pass
    return 0


# ----------------------------------------------------------------------------
# Pure-JAX reference (mirrors the PyTorch forward, (B, T, D) layout).
# cast_bf16=True mirrors the kernel's bf16-weight / f32-accumulate matmuls.
# ----------------------------------------------------------------------------
def _ref_ln(x, w, b):
    m = x.mean(-1, keepdims=True)
    v = ((x - m) ** 2).mean(-1, keepdims=True)
    return (x - m) / jnp.sqrt(v + 1e-5) * w + b


def _ref_shift(x):
    return jnp.concatenate([jnp.zeros_like(x[:, :1]), x[:, :-1]], axis=1)


def _ref_matmul(z, W, cast):
    if cast:
        return jnp.dot(z.astype(jnp.bfloat16), W.astype(jnp.bfloat16),
                       preferred_element_type=jnp.float32)
    return jnp.dot(z, W, preferred_element_type=jnp.float32)


def _ref_time_mixing(x, p, mm):
    B, T, D = x.shape
    xs = _ref_shift(x)
    k = mm(x * p["mk"] + xs * (1 - p["mk"]), p["tWk"])
    v = mm(x * p["mv"] + xs * (1 - p["mv"]), p["tWv"])
    r = mm(jax.nn.sigmoid(x * p["mr"] + xs * (1 - p["mr"])), p["tWr"])
    u, w = p["u"], p["w"]
    a = jnp.zeros((B, D), jnp.float32)
    b = jnp.zeros((B, D), jnp.float32)
    outs = []
    for i in range(T):
        ki, vi = k[:, i], v[:, i]
        q = jnp.maximum(u + ki, w)
        e1 = jnp.exp(-w - q)
        e2 = jnp.exp(u + ki - q)
        a = e1 * a + e2 * vi
        b = e1 * b + e2
        outs.append(a / b)
    wkv = jnp.stack(outs, axis=1)
    return mm(wkv * r, p["tWo"]) + p["tbo"]


def _ref_channel_mixing(x, p, mm):
    xs = _ref_shift(x)
    k = x * p["cmk"] + xs * (1 - p["cmk"])
    r = x * p["cmr"] + xs * (1 - p["cmr"])
    k = jnp.square(jnp.maximum(mm(k, p["cWk"]), 0.0))
    v = mm(k, p["cWv"])
    r = jax.nn.sigmoid(mm(r, p["cWr"]))
    return r * v


def ref_forward(tokens, params, cast_bf16):
    mm = functools.partial(_ref_matmul, cast=cast_bf16)
    x = params["emb"][tokens]
    x = _ref_ln(x, params["ln_in_w"], params["ln_in_b"])
    for bp in params["blocks"]:
        x = x + _ref_time_mixing(_ref_ln(x, bp["ln1_w"], bp["ln1_b"]), bp, mm)
        x = x + _ref_channel_mixing(_ref_ln(x, bp["ln2_w"], bp["ln2_b"]), bp, mm)
    return _ref_ln(x, params["ln_out_w"], params["ln_out_b"])


# ----------------------------------------------------------------------------
# Deterministic parameter init (shapes from the PyTorch module's __init__)
# ----------------------------------------------------------------------------
def init_params(key, vocab, dim, n_layers):
    keys = iter(jax.random.split(key, 8 + 32 * n_layers))
    nxt = lambda: next(keys)
    bound = 1.0 / jnp.sqrt(dim)

    def lin():  # Linear weight, stored pre-transposed as (in, out)
        return jax.random.uniform(nxt(), (dim, dim), jnp.float32, -bound, bound)

    def vec(lo, hi):
        return jax.random.uniform(nxt(), (1, dim), jnp.float32, lo, hi)

    def ln_pair():
        return (1.0 + 0.1 * jax.random.normal(nxt(), (1, dim), jnp.float32),
                0.1 * jax.random.normal(nxt(), (1, dim), jnp.float32))

    params = {"emb": jax.random.normal(nxt(), (vocab, dim), jnp.float32)}
    params["ln_in_w"], params["ln_in_b"] = ln_pair()
    params["ln_out_w"], params["ln_out_b"] = ln_pair()

    blocks = []
    for _ in range(n_layers):
        bp = {}
        bp["ln1_w"], bp["ln1_b"] = ln_pair()
        bp["ln2_w"], bp["ln2_b"] = ln_pair()
        # TimeMixing
        bp["u"] = vec(-0.5, 0.5)
        bp["w"] = vec(-0.5, 0.5)
        bp["mr"], bp["mk"], bp["mv"] = vec(0.0, 1.0), vec(0.0, 1.0), vec(0.0, 1.0)
        bp["tWk"], bp["tWv"], bp["tWr"], bp["tWo"] = lin(), lin(), lin(), lin()
        bp["tbo"] = jax.random.uniform(nxt(), (1, dim), jnp.float32, -bound, bound)
        # ChannelMixing (its ln_out Linear is unused in the reference forward)
        bp["cmr"], bp["cmk"] = vec(0.0, 1.0), vec(0.0, 1.0)
        bp["cWk"], bp["cWv"], bp["cWr"] = lin(), lin(), lin()
        blocks.append(bp)
    params["blocks"] = blocks
    return params


# ----------------------------------------------------------------------------
if __name__ == "__main__":
    vocab, dim, n_layers = 64, 128, 2        # D multiple of 128 (lane-dense)
    B, T = 2, 8                              # T*B = 16, multiple of 8

    key = jax.random.PRNGKey(0)
    pkey, tkey = jax.random.split(key)
    params = init_params(pkey, vocab, dim, n_layers)
    stacked = stack_params(params["blocks"])
    tokens = jax.random.randint(tkey, (B, T), 0, vocab, dtype=jnp.int32)

    roll_mode = probe_roll_convention()
    fwd = jax.jit(functools.partial(pallas_forward, roll_mode=roll_mode))
    out = jax.block_until_ready(fwd(tokens, params, stacked))

    # Matched-precision reference (bf16 matmuls, f32 accumulate) and the
    # faithful full-f32 reference.
    ref_match = ref_forward(tokens, params, cast_bf16=True)
    ref_f32 = ref_forward(tokens, params, cast_bf16=False)

    err_match = float(jnp.max(jnp.abs(out - ref_match)))
    err_f32 = float(jnp.max(jnp.abs(out - ref_f32)))

    assert bool(jnp.all(jnp.isfinite(out))), "non-finite output"
    assert err_match < 3e-2, f"mismatch vs matched reference: {err_match}"
    assert err_f32 < 2e-1, f"mismatch vs f32 reference: {err_f32}"
    print("KERNEL_OK")
</pallas_src>

<mosaic_0001>
module attributes {stable_mosaic.version = 11 : i64} {
  func.func @rwkv_stack_kernel(%arg0: i32, %arg1: memref<16x128xf32, #tpu.memory_space<vmem>>, %arg2: memref<8x128xf32, #tpu.memory_space<vmem>>, %arg3: memref<1x16x128xf32, #tpu.memory_space<vmem>>, %arg4: memref<1x7x128x128xbf16, #tpu.memory_space<vmem>>, %arg5: memref<16x128xf32, #tpu.memory_space<vmem>>, %arg6: memref<8x2x128xf32, #tpu.memory_space<vmem>>, %arg7: memref<8x2x128xf32, #tpu.memory_space<vmem>>, %arg8: memref<8x2x128xf32, #tpu.memory_space<vmem>>) attributes {dimension_semantics = [#tpu.dimension_semantics<arbitrary>], iteration_bounds = array<i64: 2>, scalar_prefetch = 0 : i64, scratch_operands = 3 : i64, tpu.core_type = #tpu.core_type<tc>, window_params = [{pipeline_mode = #tpu.pipeline_mode<synchronous>, transform_indices = @transform_0, window_bounds = array<i64: 16, 128>}, {pipeline_mode = #tpu.pipeline_mode<synchronous>, transform_indices = @transform_1, window_bounds = array<i64: 8, 128>}, {transform_indices = @transform_2, window_bounds = array<i64: 1, 16, 128>}, {transform_indices = @transform_3, window_bounds = array<i64: 1, 7, 128, 128>}, {pipeline_mode = #tpu.pipeline_mode<synchronous>, transform_indices = @transform_4, window_bounds = array<i64: 16, 128>}]} {
    %c0_i32 = arith.constant 0 : i32
    %0 = arith.cmpi eq, %arg0, %c0_i32 : i32
    %1 = arith.extui %0 : i1 to i32
    %c0_i32_0 = arith.constant 0 : i32
    %2 = arith.cmpi ne, %1, %c0_i32_0 : i32
    scf.if %2 {
      %c0_178 = arith.constant 0 : index
      %c0_179 = arith.constant 0 : index
      %342 = vector.load %arg1[%c0_178, %c0_179] : memref<16x128xf32, #tpu.memory_space<vmem>>, vector<16x128xf32>
      %c0_180 = arith.constant 0 : index
      %c0_181 = arith.constant 0 : index
      %343 = vector.load %arg2[%c0_180, %c0_181] : memref<8x128xf32, #tpu.memory_space<vmem>>, vector<1x128xf32>
      %c1_182 = arith.constant 1 : index
      %c0_183 = arith.constant 0 : index
      %344 = vector.load %arg2[%c1_182, %c0_183] : memref<8x128xf32, #tpu.memory_space<vmem>>, vector<1x128xf32>
      %cst_184 = arith.constant dense<0.000000e+00> : vector<16xf32>
      %345 = vector.multi_reduction <add>, %342, %cst_184 [1] : vector<16x128xf32> to vector<16xf32>
      %346 = vector.shape_cast %345 : vector<16xf32> to vector<16x1xf32>
      %cst_185 = arith.constant 1.280000e+02 : f32
      %347 = vector.broadcast %cst_185 : f32 to vector<16x1xf32>
      %348 = arith.divf %346, %347 : vector<16x1xf32>
      %349 = vector.broadcast %348 : vector<16x1xf32> to vector<16x128xf32>
      %350 = arith.subf %342, %349 : vector<16x128xf32>
      %351 = arith.mulf %350, %350 : vector<16x128xf32>
      %cst_186 = arith.constant dense<0.000000e+00> : vector<16xf32>
      %352 = vector.multi_reduction <add>, %351, %cst_186 [1] : vector<16x128xf32> to vector<16xf32>
      %353 = vector.shape_cast %352 : vector<16xf32> to vector<16x1xf32>
      %cst_187 = arith.constant 1.280000e+02 : f32
      %354 = vector.broadcast %cst_187 : f32 to vector<16x1xf32>
      %355 = arith.divf %353, %354 : vector<16x1xf32>
      %356 = vector.broadcast %348 : vector<16x1xf32> to vector<16x128xf32>
      %357 = arith.subf %342, %356 : vector<16x128xf32>
      %cst_188 = arith.constant 9.99999974E-6 : f32
      %358 = vector.broadcast %cst_188 : f32 to vector<16x1xf32>
      %359 = arith.addf %355, %358 : vector<16x1xf32>
      %360 = math.rsqrt %359 : vector<16x1xf32>
      %361 = vector.broadcast %360 : vector<16x1xf32> to vector<16x128xf32>
      %362 = arith.mulf %357, %361 : vector<16x128xf32>
      %363 = vector.broadcast %343 : vector<1x128xf32> to vector<16x128xf32>
      %364 = arith.mulf %362, %363 : vector<16x128xf32>
      %365 = vector.broadcast %344 : vector<1x128xf32> to vector<16x128xf32>
      %366 = arith.addf %364, %365 : vector<16x128xf32>
      %c0_189 = arith.constant 0 : index
      %c0_190 = arith.constant 0 : index
      %367 = vector.load %arg5[%c0_189, %c0_190] : memref<16x128xf32, #tpu.memory_space<vmem>>, vector<16x128xf32>
      tpu.vector_store %arg5[%c0_189, %c0_190], %366 {strides = array<i32>} : memref<16x128xf32, #tpu.memory_space<vmem>>, vector<16x128xf32>,
    } else {
    }
    %c0 = arith.constant 0 : index
    %c0_1 = arith.constant 0 : index
    %3 = vector.load %arg5[%c0, %c0_1] : memref<16x128xf32, #tpu.memory_space<vmem>>, vector<16x128xf32>
    %c0_2 = arith.constant 0 : index
    %c0_3 = arith.constant 0 : index
    %c0_4 = arith.constant 0 : index
    %4 = vector.load %arg3[%c0_2, %c0_3, %c0_4] : memref<1x16x128xf32, #tpu.memory_space<vmem>>, vector<1x1x128xf32>
    %5 = vector.shape_cast %4 : vector<1x1x128xf32> to vector<1x128xf32>
    %c0_5 = arith.constant 0 : index
    %c1 = arith.constant 1 : index
    %c0_6 = arith.constant 0 : index
    %6 = vector.load %arg3[%c0_5, %c1, %c0_6] : memref<1x16x128xf32, #tpu.memory_space<vmem>>, vector<1x1x128xf32>
    %7 = vector.shape_cast %6 : vector<1x1x128xf32> to vector<1x128xf32>
    %cst = arith.constant dense<0.000000e+00> : vector<16xf32>
    %8 = vector.multi_reduction <add>, %3, %cst [1] : vector<16x128xf32> to vector<16xf32>
    %9 = vector.shape_cast %8 : vector<16xf32> to vector<16x1xf32>
    %cst_7 = arith.constant 1.280000e+02 : f32
    %10 = vector.broadcast %cst_7 : f32 to vector<16x1xf32>
    %11 = arith.divf %9, %10 : vector<16x1xf32>
    %12 = vector.broadcast %11 : vector<16x1xf32> to vector<16x128xf32>
    %13 = arith.subf %3, %12 : vector<16x128xf32>
    %14 = arith.mulf %13, %13 : vector<16x128xf32>
    %cst_8 = arith.constant dense<0.000000e+00> : vector<16xf32>
    %15 = vector.multi_reduction <add>, %14, %cst_8 [1] : vector<16x128xf32> to vector<16xf32>
    %16 = vector.shape_cast %15 : vector<16xf32> to vector<16x1xf32>
    %cst_9 = arith.constant 1.280000e+02 : f32
    %17 = vector.broadcast %cst_9 : f32 to vector<16x1xf32>
    %18 = arith.divf %16, %17 : vector<16x1xf32>
    %19 = vector.broadcast %11 : vector<16x1xf32> to vector<16x128xf32>
    %20 = arith.subf %3, %19 : vector<16x128xf32>
    %cst_10 = arith.constant 9.99999974E-6 : f32
    %21 = vector.broadcast %cst_10 : f32 to vector<16x1xf32>
    %22 = arith.addf %18, %21 : vector<16x1xf32>
    %23 = math.rsqrt %22 : vector<16x1xf32>
    %24 = vector.broadcast %23 : vector<16x1xf32> to vector<16x128xf32>
    %25 = arith.mulf %20, %24 : vector<16x128xf32>
    %26 = vector.broadcast %5 : vector<1x128xf32> to vector<16x128xf32>
    %27 = arith.mulf %25, %26 : vector<16x128xf32>
    %28 = vector.broadcast %7 : vector<1x128xf32> to vector<16x128xf32>
    %29 = arith.addf %27, %28 : vector<16x128xf32>
    %cst_11 = arith.constant 0.000000e+00 : f32
    %30 = vector.broadcast %cst_11 : f32 to vector<2x128xf32>
    %31 = vector.extract_strided_slice %29 {offsets = [0, 0], sizes = [14, 128], strides = [1, 1]} : vector<16x128xf32> to vector<14x128xf32>
    %32 = tpu.concatenate %30, %31 in 0 : vector<2x128xf32>, vector<14x128xf32> -> vector<16x128xf32>
    %33 = arith.subf %29, %32 : vector<16x128xf32>
    %c0_12 = arith.constant 0 : index
    %c7 = arith.constant 7 : index
    %c0_13 = arith.constant 0 : index
    %34 = vector.load %arg3[%c0_12, %c7, %c0_13] : memref<1x16x128xf32, #tpu.memory_space<vmem>>, vector<1x1x128xf32>
    %35 = vector.shape_cast %34 : vector<1x1x128xf32> to vector<1x128xf32>
    %36 = vector.broadcast %35 : vector<1x128xf32> to vector<16x128xf32>
    %37 = arith.mulf %33, %36 : vector<16x128xf32>
    %38 = arith.addf %32, %37 : vector<16x128xf32>
    %39 = arith.truncf %38 : vector<16x128xf32> to vector<16x128xbf16>
    %c0_14 = arith.constant 0 : index
    %c0_15 = arith.constant 0 : index
    %c0_16 = arith.constant 0 : index
    %c0_17 = arith.constant 0 : index
    %40 = vector.load %arg4[%c0_14, %c0_15, %c0_16, %c0_17] : memref<1x7x128x128xbf16, #tpu.memory_space<vmem>>, vector<1x1x128x128xbf16>
    %41 = vector.shape_cast %40 : vector<1x1x128x128xbf16> to vector<128x128xbf16>
    %cst_18 = arith.constant dense<0.000000e+00> : vector<16x128xf32>
    %42 = tpu.matmul %39, %41, %cst_18 {dimension_numbers = #tpu.dot_dimension_numbers<[1], [0], [0], [1], [0, 0, 1, 1], [], []>} : vector<16x128xbf16>, vector<128x128xbf16>, vector<16x128xf32> -> vector<16x128xf32>
    %c0_19 = arith.constant 0 : index
    %c8 = arith.constant 8 : index
    %c0_20 = arith.constant 0 : index
    %43 = vector.load %arg3[%c0_19, %c8, %c0_20] : memref<1x16x128xf32, #tpu.memory_space<vmem>>, vector<1x1x128xf32>
    %44 = vector.shape_cast %43 : vector<1x1x128xf32> to vector<1x128xf32>
    %45 = vector.broadcast %44 : vector<1x128xf32> to vector<16x128xf32>
    %46 = arith.mulf %33, %45 : vector<16x128xf32>
    %47 = arith.addf %32, %46 : vector<16x128xf32>
    %48 = arith.truncf %47 : vector<16x128xf32> to vector<16x128xbf16>
    %c0_21 = arith.constant 0 : index
    %c1_22 = arith.constant 1 : index
    %c0_23 = arith.constant 0 : index
    %c0_24 = arith.constant 0 : index
    %49 = vector.load %arg4[%c0_21, %c1_22, %c0_23, %c0_24] : memref<1x7x128x128xbf16, #tpu.memory_space<vmem>>, vector<1x1x128x128xbf16>
    %50 = vector.shape_cast %49 : vector<1x1x128x128xbf16> to vector<128x128xbf16>
    %cst_25 = arith.constant dense<0.000000e+00> : vector<16x128xf32>
    %51 = tpu.matmul %48, %50, %cst_25 {dimension_numbers = #tpu.dot_dimension_numbers<[1], [0], [0], [1], [0, 0, 1, 1], [], []>} : vector<16x128xbf16>, vector<128x128xbf16>, vector<16x128xf32> -> vector<16x128xf32>
    %c0_26 = arith.constant 0 : index
    %c6 = arith.constant 6 : index
    %c0_27 = arith.constant 0 : index
    %52 = vector.load %arg3[%c0_26, %c6, %c0_27] : memref<1x16x128xf32, #tpu.memory_space<vmem>>, vector<1x1x128xf32>
    %53 = vector.shape_cast %52 : vector<1x1x128xf32> to vector<1x128xf32>
    %54 = vector.broadcast %53 : vector<1x128xf32> to vector<16x128xf32>
    %55 = arith.mulf %33, %54 : vector<16x128xf32>
    %56 = arith.addf %32, %55 : vector<16x128xf32>
    %57 = arith.negf %56 : vector<16x128xf32>
    %58 = math.exp %57 : vector<16x128xf32>
    %cst_28 = arith.constant 1.000000e+00 : f32
    %59 = vector.broadcast %cst_28 : f32 to vector<16x128xf32>
    %60 = arith.addf %59, %58 : vector<16x128xf32>
    %61 = arith.divf %59, %60 : vector<16x128xf32>
    %62 = arith.truncf %61 : vector<16x128xf32> to vector<16x128xbf16>
    %c0_29 = arith.constant 0 : index
    %c2 = arith.constant 2 : index
    %c0_30 = arith.constant 0 : index
    %c0_31 = arith.constant 0 : index
    %63 = vector.load %arg4[%c0_29, %c2, %c0_30, %c0_31] : memref<1x7x128x128xbf16, #tpu.memory_space<vmem>>, vector<1x1x128x128xbf16>
    %64 = vector.shape_cast %63 : vector<1x1x128x128xbf16> to vector<128x128xbf16>
    %cst_32 = arith.constant dense<0.000000e+00> : vector<16x128xf32>
    %65 = tpu.matmul %62, %64, %cst_32 {dimension_numbers = #tpu.dot_dimension_numbers<[1], [0], [0], [1], [0, 0, 1, 1], [], []>} : vector<16x128xbf16>, vector<128x128xbf16>, vector<16x128xf32> -> vector<16x128xf32>
    %c0_33 = arith.constant 0 : index
    %c4 = arith.constant 4 : index
    %c0_34 = arith.constant 0 : index
    %66 = vector.load %arg3[%c0_33, %c4, %c0_34] : memref<1x16x128xf32, #tpu.memory_space<vmem>>, vector<1x1x128xf32>
    %67 = vector.shape_cast %66 : vector<1x1x128xf32> to vector<1x128xf32>
    %c0_35 = arith.constant 0 : index
    %c5 = arith.constant 5 : index
    %c0_36 = arith.constant 0 : index
    %68 = vector.load %arg3[%c0_35, %c5, %c0_36] : memref<1x16x128xf32, #tpu.memory_space<vmem>>, vector<1x1x128xf32>
    %69 = vector.shape_cast %68 : vector<1x1x128xf32> to vector<1x128xf32>
    %70 = vector.broadcast %67 : vector<1x128xf32> to vector<16x128xf32>
    %71 = arith.addf %70, %42 : vector<16x128xf32>
    %72 = vector.broadcast %69 : vector<1x128xf32> to vector<16x128xf32>
    %73 = arith.maximumf %71, %72 : vector<16x128xf32>
    %74 = vector.broadcast %67 : vector<1x128xf32> to vector<16x128xf32>
    %75 = arith.addf %74, %42 : vector<16x128xf32>
    %76 = arith.subf %75, %73 : vector<16x128xf32>
    %77 = math.exp %76 : vector<16x128xf32>
    %cst_37 = arith.constant 0.000000e+00 : f32
    %78 = vector.broadcast %cst_37 : f32 to vector<1x128xf32>
    %79 = arith.subf %78, %69 : vector<1x128xf32>
    %80 = vector.broadcast %79 : vector<1x128xf32> to vector<16x128xf32>
    %81 = arith.subf %80, %73 : vector<16x128xf32>
    %82 = math.exp %81 : vector<16x128xf32>
    %83 = vector.shape_cast %82 : vector<16x128xf32> to vector<8x2x128xf32>
    %c0_38 = arith.constant 0 : index
    %c0_39 = arith.constant 0 : index
    %c0_40 = arith.constant 0 : index
    %84 = vector.load %arg6[%c0_38, %c0_39, %c0_40] : memref<8x2x128xf32, #tpu.memory_space<vmem>>, vector<8x2x128xf32>
    tpu.vector_store %arg6[%c0_38, %c0_39, %c0_40], %83 {strides = array<i32>} : memref<8x2x128xf32, #tpu.memory_space<vmem>>, vector<8x2x128xf32>,
    %85 = vector.shape_cast %77 : vector<16x128xf32> to vector<8x2x128xf32>
    %c0_41 = arith.constant 0 : index
    %c0_42 = arith.constant 0 : index
    %c0_43 = arith.constant 0 : index
    %86 = vector.load %arg7[%c0_41, %c0_42, %c0_43] : memref<8x2x128xf32, #tpu.memory_space<vmem>>, vector<8x2x128xf32>
    tpu.vector_store %arg7[%c0_41, %c0_42, %c0_43], %85 {strides = array<i32>} : memref<8x2x128xf32, #tpu.memory_space<vmem>>, vector<8x2x128xf32>,
    %87 = arith.mulf %77, %51 : vector<16x128xf32>
    %88 = vector.shape_cast %87 : vector<16x128xf32> to vector<8x2x128xf32>
    %c0_44 = arith.constant 0 : index
    %c0_45 = arith.constant 0 : index
    %c0_46 = arith.constant 0 : index
    %89 = vector.load %arg8[%c0_44, %c0_45, %c0_46] : memref<8x2x128xf32, #tpu.memory_space<vmem>>, vector<8x2x128xf32>
    tpu.vector_store %arg8[%c0_44, %c0_45, %c0_46], %88 {strides = array<i32>} : memref<8x2x128xf32, #tpu.memory_space<vmem>>, vector<8x2x128xf32>,
    %cst_47 = arith.constant 0.000000e+00 : f32
    %90 = vector.broadcast %cst_47 : f32 to vector<2x128xf32>
    %c0_i32_48 = arith.constant 0 : i32
    %91 = arith.index_cast %c0_i32_48 : i32 to index
    %c0_49 = arith.constant 0 : index
    %c0_50 = arith.constant 0 : index
    %92 = vector.load %arg6[%91, %c0_49, %c0_50] : memref<8x2x128xf32, #tpu.memory_space<vmem>>, vector<1x2x128xf32>
    %93 = vector.shape_cast %92 : vector<1x2x128xf32> to vector<2x128xf32>
    %94 = arith.mulf %93, %90 : vector<2x128xf32>
    %95 = arith.index_cast %c0_i32_48 : i32 to index
    %c0_51 = arith.constant 0 : index
    %c0_52 = arith.constant 0 : index
    %96 = vector.load %arg8[%95, %c0_51, %c0_52] : memref<8x2x128xf32, #tpu.memory_space<vmem>>, vector<1x2x128xf32>
    %97 = vector.shape_cast %96 : vector<1x2x128xf32> to vector<2x128xf32>
    %98 = arith.addf %94, %97 : vector<2x128xf32>
    %99 = arith.mulf %93, %90 : vector<2x128xf32>
    %100 = arith.index_cast %c0_i32_48 : i32 to index
    %c0_53 = arith.constant 0 : index
    %c0_54 = arith.constant 0 : index
    %101 = vector.load %arg7[%100, %c0_53, %c0_54] : memref<8x2x128xf32, #tpu.memory_space<vmem>>, vector<1x2x128xf32>
    %102 = vector.shape_cast %101 : vector<1x2x128xf32> to vector<2x128xf32>
    %103 = arith.addf %99, %102 : vector<2x128xf32>
    %104 = arith.index_cast %c0_i32_48 : i32 to index
    %c0_55 = arith.constant 0 : index
    %c0_56 = arith.constant 0 : index
    %105 = vector.load %arg8[%104, %c0_55, %c0_56] : memref<8x2x128xf32, #tpu.memory_space<vmem>>, vector<1x2x128xf32>
    %106 = vector.shape_cast %105 : vector<1x2x128xf32> to vector<2x128xf32>
    %107 = vector.shape_cast %98 : vector<2x128xf32> to vector<1x2x128xf32>
    tpu.vector_store %arg8[%104, %c0_55, %c0_56], %107 {strides = array<i32>} : memref<8x2x128xf32, #tpu.memory_space<vmem>>, vector<1x2x128xf32>,
    %108 = arith.index_cast %c0_i32_48 : i32 to index
    %c0_57 = arith.constant 0 : index
    %c0_58 = arith.constant 0 : index
    %109 = vector.load %arg7[%108, %c0_57, %c0_58] : memref<8x2x128xf32, #tpu.memory_space<vmem>>, vector<1x2x128xf32>
    %110 = vector.shape_cast %109 : vector<1x2x128xf32> to vector<2x128xf32>
    %111 = vector.shape_cast %103 : vector<2x128xf32> to vector<1x2x128xf32>
    tpu.vector_store %arg7[%108, %c0_57, %c0_58], %111 {strides = array<i32>} : memref<8x2x128xf32, #tpu.memory_space<vmem>>, vector<1x2x128xf32>,
    %c1_i32 = arith.constant 1 : i32
    %112 = arith.index_cast %c1_i32 : i32 to index
    %c0_59 = arith.constant 0 : index
    %c0_60 = arith.constant 0 : index
    %113 = vector.load %arg6[%112, %c0_59, %c0_60] : memref<8x2x128xf32, #tpu.memory_space<vmem>>, vector<1x2x128xf32>
    %114 = vector.shape_cast %113 : vector<1x2x128xf32> to vector<2x128xf32>
    %115 = arith.mulf %114, %98 : vector<2x128xf32>
    %116 = arith.index_cast %c1_i32 : i32 to index
    %c0_61 = arith.constant 0 : index
    %c0_62 = arith.constant 0 : index
    %117 = vector.load %arg8[%116, %c0_61, %c0_62] : memref<8x2x128xf32, #tpu.memory_space<vmem>>, vector<1x2x128xf32>
    %118 = vector.shape_cast %117 : vector<1x2x128xf32> to vector<2x128xf32>
    %119 = arith.addf %115, %118 : vector<2x128xf32>
    %120 = arith.mulf %114, %103 : vector<2x128xf32>
    %121 = arith.index_cast %c1_i32 : i32 to index
    %c0_63 = arith.constant 0 : index
    %c0_64 = arith.constant 0 : index
    %122 = vector.load %arg7[%121, %c0_63, %c0_64] : memref<8x2x128xf32, #tpu.memory_space<vmem>>, vector<1x2x128xf32>
    %123 = vector.shape_cast %122 : vector<1x2x128xf32> to vector<2x128xf32>
    %124 = arith.addf %120, %123 : vector<2x128xf32>
    %125 = arith.index_cast %c1_i32 : i32 to index
    %c0_65 = arith.constant 0 : index
    %c0_66 = arith.constant 0 : index
    %126 = vector.load %arg8[%125, %c0_65, %c0_66] : memref<8x2x128xf32, #tpu.memory_space<vmem>>, vector<1x2x128xf32>
    %127 = vector.shape_cast %126 : vector<1x2x128xf32> to vector<2x128xf32>
    %128 = vector.shape_cast %119 : vector<2x128xf32> to vector<1x2x128xf32>
    tpu.vector_store %arg8[%125, %c0_65, %c0_66], %128 {strides = array<i32>} : memref<8x2x128xf32, #tpu.memory_space<vmem>>, vector<1x2x128xf32>,
    %129 = arith.index_cast %c1_i32 : i32 to index
    %c0_67 = arith.constant 0 : index
    %c0_68 = arith.constant 0 : index
    %130 = vector.load %arg7[%129, %c0_67, %c0_68] : memref<8x2x128xf32, #tpu.memory_space<vmem>>, vector<1x2x128xf32>
    %131 = vector.shape_cast %130 : vector<1x2x128xf32> to vector<2x128xf32>
    %132 = vector.shape_cast %124 : vector<2x128xf32> to vector<1x2x128xf32>
    tpu.vector_store %arg7[%129, %c0_67, %c0_68], %132 {strides = array<i32>} : memref<8x2x128xf32, #tpu.memory_space<vmem>>, vector<1x2x128xf32>,
    %c2_i32 = arith.constant 2 : i32
    %133 = arith.index_cast %c2_i32 : i32 to index
    %c0_69 = arith.constant 0 : index
    %c0_70 = arith.constant 0 : index
    %134 = vector.load %arg6[%133, %c0_69, %c0_70] : memref<8x2x128xf32, #tpu.memory_space<vmem>>, vector<1x2x128xf32>
    %135 = vector.shape_cast %134 : vector<1x2x128xf32> to vector<2x128xf32>
    %136 = arith.mulf %135, %119 : vector<2x128xf32>
    %137 = arith.index_cast %c2_i32 : i32 to index
    %c0_71 = arith.constant 0 : index
    %c0_72 = arith.constant 0 : index
    %138 = vector.load %arg8[%137, %c0_71, %c0_72] : memref<8x2x128xf32, #tpu.memory_space<vmem>>, vector<1x2x128xf32>
    %139 = vector.shape_cast %138 : vector<1x2x128xf32> to vector<2x128xf32>
    %140 = arith.addf %136, %139 : vector<2x128xf32>
    %141 = arith.mulf %135, %124 : vector<2x128xf32>
    %142 = arith.index_cast %c2_i32 : i32 to index
    %c0_73 = arith.constant 0 : index
    %c0_74 = arith.constant 0 : index
    %143 = vector.load %arg7[%142, %c0_73, %c0_74] : memref<8x2x128xf32, #tpu.memory_space<vmem>>, vector<1x2x128xf32>
    %144 = vector.shape_cast %143 : vector<1x2x128xf32> to vector<2x128xf32>
    %145 = arith.addf %141, %144 : vector<2x128xf32>
    %146 = arith.index_cast %c2_i32 : i32 to index
    %c0_75 = arith.constant 0 : index
    %c0_76 = arith.constant 0 : index
    %147 = vector.load %arg8[%146, %c0_75, %c0_76] : memref<8x2x128xf32, #tpu.memory_space<vmem>>, vector<1x2x128xf32>
    %148 = vector.shape_cast %147 : vector<1x2x128xf32> to vector<2x128xf32>
    %149 = vector.shape_cast %140 : vector<2x128xf32> to vector<1x2x128xf32>
    tpu.vector_store %arg8[%146, %c0_75, %c0_76], %149 {strides = array<i32>} : memref<8x2x128xf32, #tpu.memory_space<vmem>>, vector<1x2x128xf32>,
    %150 = arith.index_cast %c2_i32 : i32 to index
    %c0_77 = arith.constant 0 : index
    %c0_78 = arith.constant 0 : index
    %151 = vector.load %arg7[%150, %c0_77, %c0_78] : memref<8x2x128xf32, #tpu.memory_space<vmem>>, vector<1x2x128xf32>
    %152 = vector.shape_cast %151 : vector<1x2x128xf32> to vector<2x128xf32>
    %153 = vector.shape_cast %145 : vector<2x128xf32> to vector<1x2x128xf32>
    tpu.vector_store %arg7[%150, %c0_77, %c0_78], %153 {strides = array<i32>} : memref<8x2x128xf32, #tpu.memory_space<vmem>>, vector<1x2x128xf32>,
    %c3_i32 = arith.constant 3 : i32
    %154 = arith.index_cast %c3_i32 : i32 to index
    %c0_79 = arith.constant 0 : index
    %c0_80 = arith.constant 0 : index
    %155 = vector.load %arg6[%154, %c0_79, %c0_80] : memref<8x2x128xf32, #tpu.memory_space<vmem>>, vector<1x2x128xf32>
    %156 = vector.shape_cast %155 : vector<1x2x128xf32> to vector<2x128xf32>
    %157 = arith.mulf %156, %140 : vector<2x128xf32>
    %158 = arith.index_cast %c3_i32 : i32 to index
    %c0_81 = arith.constant 0 : index
    %c0_82 = arith.constant 0 : index
    %159 = vector.load %arg8[%158, %c0_81, %c0_82] : memref<8x2x128xf32, #tpu.memory_space<vmem>>, vector<1x2x128xf32>
    %160 = vector.shape_cast %159 : vector<1x2x128xf32> to vector<2x128xf32>
    %161 = arith.addf %157, %160 : vector<2x128xf32>
    %162 = arith.mulf %156, %145 : vector<2x128xf32>
    %163 = arith.index_cast %c3_i32 : i32 to index
    %c0_83 = arith.constant 0 : index
    %c0_84 = arith.constant 0 : index
    %164 = vector.load %arg7[%163, %c0_83, %c0_84] : memref<8x2x128xf32, #tpu.memory_space<vmem>>, vector<1x2x128xf32>
    %165 = vector.shape_cast %164 : vector<1x2x128xf32> to vector<2x128xf32>
    %166 = arith.addf %162, %165 : vector<2x128xf32>
    %167 = arith.index_cast %c3_i32 : i32 to index
    %c0_85 = arith.constant 0 : index
    %c0_86 = arith.constant 0 : index
    %168 = vector.load %arg8[%167, %c0_85, %c0_86] : memref<8x2x128xf32, #tpu.memory_space<vmem>>, vector<1x2x128xf32>
    %169 = vector.shape_cast %168 : vector<1x2x128xf32> to vector<2x128xf32>
    %170 = vector.shape_cast %161 : vector<2x128xf32> to vector<1x2x128xf32>
    tpu.vector_store %arg8[%167, %c0_85, %c0_86], %170 {strides = array<i32>} : memref<8x2x128xf32, #tpu.memory_space<vmem>>, vector<1x2x128xf32>,
    %171 = arith.index_cast %c3_i32 : i32 to index
    %c0_87 = arith.constant 0 : index
    %c0_88 = arith.constant 0 : index
    %172 = vector.load %arg7[%171, %c0_87, %c0_88] : memref<8x2x128xf32, #tpu.memory_space<vmem>>, vector<1x2x128xf32>
    %173 = vector.shape_cast %172 : vector<1x2x128xf32> to vector<2x128xf32>
    %174 = vector.shape_cast %166 : vector<2x128xf32> to vector<1x2x128xf32>
    tpu.vector_store %arg7[%171, %c0_87, %c0_88], %174 {strides = array<i32>} : memref<8x2x128xf32, #tpu.memory_space<vmem>>, vector<1x2x128xf32>,
    %c4_i32 = arith.constant 4 : i32
    %175 = arith.index_cast %c4_i32 : i32 to index
    %c0_89 = arith.constant 0 : index
    %c0_90 = arith.constant 0 : index
    %176 = vector.load %arg6[%175, %c0_89, %c0_90] : memref<8x2x128xf32, #tpu.memory_space<vmem>>, vector<1x2x128xf32>
    %177 = vector.shape_cast %176 : vector<1x2x128xf32> to vector<2x128xf32>
    %178 = arith.mulf %177, %161 : vector<2x128xf32>
    %179 = arith.index_cast %c4_i32 : i32 to index
    %c0_91 = arith.constant 0 : index
    %c0_92 = arith.constant 0 : index
    %180 = vector.load %arg8[%179, %c0_91, %c0_92] : memref<8x2x128xf32, #tpu.memory_space<vmem>>, vector<1x2x128xf32>
    %181 = vector.shape_cast %180 : vector<1x2x128xf32> to vector<2x128xf32>
    %182 = arith.addf %178, %181 : vector<2x128xf32>
    %183 = arith.mulf %177, %166 : vector<2x128xf32>
    %184 = arith.index_cast %c4_i32 : i32 to index
    %c0_93 = arith.constant 0 : index
    %c0_94 = arith.constant 0 : index
    %185 = vector.load %arg7[%184, %c0_93, %c0_94] : memref<8x2x128xf32, #tpu.memory_space<vmem>>, vector<1x2x128xf32>
    %186 = vector.shape_cast %185 : vector<1x2x128xf32> to vector<2x128xf32>
    %187 = arith.addf %183, %186 : vector<2x128xf32>
    %188 = arith.index_cast %c4_i32 : i32 to index
    %c0_95 = arith.constant 0 : index
    %c0_96 = arith.constant 0 : index
    %189 = vector.load %arg8[%188, %c0_95, %c0_96] : memref<8x2x128xf32, #tpu.memory_space<vmem>>, vector<1x2x128xf32>
    %190 = vector.shape_cast %189 : vector<1x2x128xf32> to vector<2x128xf32>
    %191 = vector.shape_cast %182 : vector<2x128xf32> to vector<1x2x128xf32>
    tpu.vector_store %arg8[%188, %c0_95, %c0_96], %191 {strides = array<i32>} : memref<8x2x128xf32, #tpu.memory_space<vmem>>, vector<1x2x128xf32>,
    %192 = arith.index_cast %c4_i32 : i32 to index
    %c0_97 = arith.constant 0 : index
    %c0_98 = arith.constant 0 : index
    %193 = vector.load %arg7[%192, %c0_97, %c0_98] : memref<8x2x128xf32, #tpu.memory_space<vmem>>, vector<1x2x128xf32>
    %194 = vector.shape_cast %193 : vector<1x2x128xf32> to vector<2x128xf32>
    %195 = vector.shape_cast %187 : vector<2x128xf32> to vector<1x2x128xf32>
    tpu.vector_store %arg7[%192, %c0_97, %c0_98], %195 {strides = array<i32>} : memref<8x2x128xf32, #tpu.memory_space<vmem>>, vector<1x2x128xf32>,
    %c5_i32 = arith.constant 5 : i32
    %196 = arith.index_cast %c5_i32 : i32 to index
    %c0_99 = arith.constant 0 : index
    %c0_100 = arith.constant 0 : index
    %197 = vector.load %arg6[%196, %c0_99, %c0_100] : memref<8x2x128xf32, #tpu.memory_space<vmem>>, vector<1x2x128xf32>
    %198 = vector.shape_cast %197 : vector<1x2x128xf32> to vector<2x128xf32>
    %199 = arith.mulf %198, %182 : vector<2x128xf32>
    %200 = arith.index_cast %c5_i32 : i32 to index
    %c0_101 = arith.constant 0 : index
    %c0_102 = arith.constant 0 : index
    %201 = vector.load %arg8[%200, %c0_101, %c0_102] : memref<8x2x128xf32, #tpu.memory_space<vmem>>, vector<1x2x128xf32>
    %202 = vector.shape_cast %201 : vector<1x2x128xf32> to vector<2x128xf32>
    %203 = arith.addf %199, %202 : vector<2x128xf32>
    %204 = arith.mulf %198, %187 : vector<2x128xf32>
    %205 = arith.index_cast %c5_i32 : i32 to index
    %c0_103 = arith.constant 0 : index
    %c0_104 = arith.constant 0 : index
    %206 = vector.load %arg7[%205, %c0_103, %c0_104] : memref<8x2x128xf32, #tpu.memory_space<vmem>>, vector<1x2x128xf32>
    %207 = vector.shape_cast %206 : vector<1x2x128xf32> to vector<2x128xf32>
    %208 = arith.addf %204, %207 : vector<2x128xf32>
    %209 = arith.index_cast %c5_i32 : i32 to index
    %c0_105 = arith.constant 0 : index
    %c0_106 = arith.constant 0 : index
    %210 = vector.load %arg8[%209, %c0_105, %c0_106] : memref<8x2x128xf32, #tpu.memory_space<vmem>>, vector<1x2x128xf32>
    %211 = vector.shape_cast %210 : vector<1x2x128xf32> to vector<2x128xf32>
    %212 = vector.shape_cast %203 : vector<2x128xf32> to vector<1x2x128xf32>
    tpu.vector_store %arg8[%209, %c0_105, %c0_106], %212 {strides = array<i32>} : memref<8x2x128xf32, #tpu.memory_space<vmem>>, vector<1x2x128xf32>,
    %213 = arith.index_cast %c5_i32 : i32 to index
    %c0_107 = arith.constant 0 : index
    %c0_108 = arith.constant 0 : index
    %214 = vector.load %arg7[%213, %c0_107, %c0_108] : memref<8x2x128xf32, #tpu.memory_space<vmem>>, vector<1x2x128xf32>
    %215 = vector.shape_cast %214 : vector<1x2x128xf32> to vector<2x128xf32>
    %216 = vector.shape_cast %208 : vector<2x128xf32> to vector<1x2x128xf32>
    tpu.vector_store %arg7[%213, %c0_107, %c0_108], %216 {strides = array<i32>} : memref<8x2x128xf32, #tpu.memory_space<vmem>>, vector<1x2x128xf32>,
    %c6_i32 = arith.constant 6 : i32
    %217 = arith.index_cast %c6_i32 : i32 to index
    %c0_109 = arith.constant 0 : index
    %c0_110 = arith.constant 0 : index
    %218 = vector.load %arg6[%217, %c0_109, %c0_110] : memref<8x2x128xf32, #tpu.memory_space<vmem>>, vector<1x2x128xf32>
    %219 = vector.shape_cast %218 : vector<1x2x128xf32> to vector<2x128xf32>
    %220 = arith.mulf %219, %203 : vector<2x128xf32>
    %221 = arith.index_cast %c6_i32 : i32 to index
    %c0_111 = arith.constant 0 : index
    %c0_112 = arith.constant 0 : index
    %222 = vector.load %arg8[%221, %c0_111, %c0_112] : memref<8x2x128xf32, #tpu.memory_space<vmem>>, vector<1x2x128xf32>
    %223 = vector.shape_cast %222 : vector<1x2x128xf32> to vector<2x128xf32>
    %224 = arith.addf %220, %223 : vector<2x128xf32>
    %225 = arith.mulf %219, %208 : vector<2x128xf32>
    %226 = arith.index_cast %c6_i32 : i32 to index
    %c0_113 = arith.constant 0 : index
    %c0_114 = arith.constant 0 : index
    %227 = vector.load %arg7[%226, %c0_113, %c0_114] : memref<8x2x128xf32, #tpu.memory_space<vmem>>, vector<1x2x128xf32>
    %228 = vector.shape_cast %227 : vector<1x2x128xf32> to vector<2x128xf32>
    %229 = arith.addf %225, %228 : vector<2x128xf32>
    %230 = arith.index_cast %c6_i32 : i32 to index
    %c0_115 = arith.constant 0 : index
    %c0_116 = arith.constant 0 : index
    %231 = vector.load %arg8[%230, %c0_115, %c0_116] : memref<8x2x128xf32, #tpu.memory_space<vmem>>, vector<1x2x128xf32>
    %232 = vector.shape_cast %231 : vector<1x2x128xf32> to vector<2x128xf32>
    %233 = vector.shape_cast %224 : vector<2x128xf32> to vector<1x2x128xf32>
    tpu.vector_store %arg8[%230, %c0_115, %c0_116], %233 {strides = array<i32>} : memref<8x2x128xf32, #tpu.memory_space<vmem>>, vector<1x2x128xf32>,
    %234 = arith.index_cast %c6_i32 : i32 to index
    %c0_117 = arith.constant 0 : index
    %c0_118 = arith.constant 0 : index
    %235 = vector.load %arg7[%234, %c0_117, %c0_118] : memref<8x2x128xf32, #tpu.memory_space<vmem>>, vector<1x2x128xf32>
    %236 = vector.shape_cast %235 : vector<1x2x128xf32> to vector<2x128xf32>
    %237 = vector.shape_cast %229 : vector<2x128xf32> to vector<1x2x128xf32>
    tpu.vector_store %arg7[%234, %c0_117, %c0_118], %237 {strides = array<i32>} : memref<8x2x128xf32, #tpu.memory_space<vmem>>, vector<1x2x128xf32>,
    %c7_i32 = arith.constant 7 : i32
    %238 = arith.index_cast %c7_i32 : i32 to index
    %c0_119 = arith.constant 0 : index
    %c0_120 = arith.constant 0 : index
    %239 = vector.load %arg6[%238, %c0_119, %c0_120] : memref<8x2x128xf32, #tpu.memory_space<vmem>>, vector<1x2x128xf32>
    %240 = vector.shape_cast %239 : vector<1x2x128xf32> to vector<2x128xf32>
    %241 = arith.mulf %240, %224 : vector<2x128xf32>
    %242 = arith.index_cast %c7_i32 : i32 to index
    %c0_121 = arith.constant 0 : index
    %c0_122 = arith.constant 0 : index
    %243 = vector.load %arg8[%242, %c0_121, %c0_122] : memref<8x2x128xf32, #tpu.memory_space<vmem>>, vector<1x2x128xf32>
    %244 = vector.shape_cast %243 : vector<1x2x128xf32> to vector<2x128xf32>
    %245 = arith.addf %241, %244 : vector<2x128xf32>
    %246 = arith.mulf %240, %229 : vector<2x128xf32>
    %247 = arith.index_cast %c7_i32 : i32 to index
    %c0_123 = arith.constant 0 : index
    %c0_124 = arith.constant 0 : index
    %248 = vector.load %arg7[%247, %c0_123, %c0_124] : memref<8x2x128xf32, #tpu.memory_space<vmem>>, vector<1x2x128xf32>
    %249 = vector.shape_cast %248 : vector<1x2x128xf32> to vector<2x128xf32>
    %250 = arith.addf %246, %249 : vector<2x128xf32>
    %251 = arith.index_cast %c7_i32 : i32 to index
    %c0_125 = arith.constant 0 : index
    %c0_126 = arith.constant 0 : index
    %252 = vector.load %arg8[%251, %c0_125, %c0_126] : memref<8x2x128xf32, #tpu.memory_space<vmem>>, vector<1x2x128xf32>
    %253 = vector.shape_cast %252 : vector<1x2x128xf32> to vector<2x128xf32>
    %254 = vector.shape_cast %245 : vector<2x128xf32> to vector<1x2x128xf32>
    tpu.vector_store %arg8[%251, %c0_125, %c0_126], %254 {strides = array<i32>} : memref<8x2x128xf32, #tpu.memory_space<vmem>>, vector<1x2x128xf32>,
    %255 = arith.index_cast %c7_i32 : i32 to index
    %c0_127 = arith.constant 0 : index
    %c0_128 = arith.constant 0 : index
    %256 = vector.load %arg7[%255, %c0_127, %c0_128] : memref<8x2x128xf32, #tpu.memory_space<vmem>>, vector<1x2x128xf32>
    %257 = vector.shape_cast %256 : vector<1x2x128xf32> to vector<2x128xf32>
    %258 = vector.shape_cast %250 : vector<2x128xf32> to vector<1x2x128xf32>
    tpu.vector_store %arg7[%255, %c0_127, %c0_128], %258 {strides = array<i32>} : memref<8x2x128xf32, #tpu.memory_space<vmem>>, vector<1x2x128xf32>,
    %c8_i32 = arith.constant 8 : i32
    %c0_129 = arith.constant 0 : index
    %c0_130 = arith.constant 0 : index
    %c0_131 = arith.constant 0 : index
    %259 = vector.load %arg8[%c0_129, %c0_130, %c0_131] : memref<8x2x128xf32, #tpu.memory_space<vmem>>, vector<8x2x128xf32>
    %260 = vector.shape_cast %259 : vector<8x2x128xf32> to vector<16x128xf32>
    %c0_132 = arith.constant 0 : index
    %c0_133 = arith.constant 0 : index
    %c0_134 = arith.constant 0 : index
    %261 = vector.load %arg7[%c0_132, %c0_133, %c0_134] : memref<8x2x128xf32, #tpu.memory_space<vmem>>, vector<8x2x128xf32>
    %262 = vector.shape_cast %261 : vector<8x2x128xf32> to vector<16x128xf32>
    %263 = arith.divf %260, %262 : vector<16x128xf32>
    %264 = arith.mulf %263, %65 : vector<16x128xf32>
    %265 = arith.truncf %264 : vector<16x128xf32> to vector<16x128xbf16>
    %c0_135 = arith.constant 0 : index
    %c3 = arith.constant 3 : index
    %c0_136 = arith.constant 0 : index
    %c0_137 = arith.constant 0 : index
    %266 = vector.load %arg4[%c0_135, %c3, %c0_136, %c0_137] : memref<1x7x128x128xbf16, #tpu.memory_space<vmem>>, vector<1x1x128x128xbf16>
    %267 = vector.shape_cast %266 : vector<1x1x128x128xbf16> to vector<128x128xbf16>
    %cst_138 = arith.constant dense<0.000000e+00> : vector<16x128xf32>
    %268 = tpu.matmul %265, %267, %cst_138 {dimension_numbers = #tpu.dot_dimension_numbers<[1], [0], [0], [1], [0, 0, 1, 1], [], []>} : vector<16x128xbf16>, vector<128x128xbf16>, vector<16x128xf32> -> vector<16x128xf32>
    %c0_139 = arith.constant 0 : index
    %c9 = arith.constant 9 : index
    %c0_140 = arith.constant 0 : index
    %269 = vector.load %arg3[%c0_139, %c9, %c0_140] : memref<1x16x128xf32, #tpu.memory_space<vmem>>, vector<1x1x128xf32>
    %270 = vector.shape_cast %269 : vector<1x1x128xf32> to vector<1x128xf32>
    %271 = vector.broadcast %270 : vector<1x128xf32> to vector<16x128xf32>
    %272 = arith.addf %268, %271 : vector<16x128xf32>
    %273 = arith.addf %3, %272 : vector<16x128xf32>
    %c0_141 = arith.constant 0 : index
    %c2_142 = arith.constant 2 : index
    %c0_143 = arith.constant 0 : index
    %274 = vector.load %arg3[%c0_141, %c2_142, %c0_143] : memref<1x16x128xf32, #tpu.memory_space<vmem>>, vector<1x1x128xf32>
    %275 = vector.shape_cast %274 : vector<1x1x128xf32> to vector<1x128xf32>
    %c0_144 = arith.constant 0 : index
    %c3_145 = arith.constant 3 : index
    %c0_146 = arith.constant 0 : index
    %276 = vector.load %arg3[%c0_144, %c3_145, %c0_146] : memref<1x16x128xf32, #tpu.memory_space<vmem>>, vector<1x1x128xf32>
    %277 = vector.shape_cast %276 : vector<1x1x128xf32> to vector<1x128xf32>
    %cst_147 = arith.constant dense<0.000000e+00> : vector<16xf32>
    %278 = vector.multi_reduction <add>, %273, %cst_147 [1] : vector<16x128xf32> to vector<16xf32>
    %279 = vector.shape_cast %278 : vector<16xf32> to vector<16x1xf32>
    %cst_148 = arith.constant 1.280000e+02 : f32
    %280 = vector.broadcast %cst_148 : f32 to vector<16x1xf32>
    %281 = arith.divf %279, %280 : vector<16x1xf32>
    %282 = vector.broadcast %281 : vector<16x1xf32> to vector<16x128xf32>
    %283 = arith.subf %273, %282 : vector<16x128xf32>
    %284 = arith.mulf %283, %283 : vector<16x128xf32>
    %cst_149 = arith.constant dense<0.000000e+00> : vector<16xf32>
    %285 = vector.multi_reduction <add>, %284, %cst_149 [1] : vector<16x128xf32> to vector<16xf32>
    %286 = vector.shape_cast %285 : vector<16xf32> to vector<16x1xf32>
    %cst_150 = arith.constant 1.280000e+02 : f32
    %287 = vector.broadcast %cst_150 : f32 to vector<16x1xf32>
    %288 = arith.divf %286, %287 : vector<16x1xf32>
    %289 = vector.broadcast %281 : vector<16x1xf32> to vector<16x128xf32>
    %290 = arith.subf %273, %289 : vector<16x128xf32>
    %cst_151 = arith.constant 9.99999974E-6 : f32
    %291 = vector.broadcast %cst_151 : f32 to vector<16x1xf32>
    %292 = arith.addf %288, %291 : vector<16x1xf32>
    %293 = math.rsqrt %292 : vector<16x1xf32>
    %294 = vector.broadcast %293 : vector<16x1xf32> to vector<16x128xf32>
    %295 = arith.mulf %290, %294 : vector<16x128xf32>
    %296 = vector.broadcast %275 : vector<1x128xf32> to vector<16x128xf32>
    %297 = arith.mulf %295, %296 : vector<16x128xf32>
    %298 = vector.broadcast %277 : vector<1x128xf32> to vector<16x128xf32>
    %299 = arith.addf %297, %298 : vector<16x128xf32>
    %cst_152 = arith.constant 0.000000e+00 : f32
    %300 = vector.broadcast %cst_152 : f32 to vector<2x128xf32>
    %301 = vector.extract_strided_slice %299 {offsets = [0, 0], sizes = [14, 128], strides = [1, 1]} : vector<16x128xf32> to vector<14x128xf32>
    %302 = tpu.concatenate %300, %301 in 0 : vector<2x128xf32>, vector<14x128xf32> -> vector<16x128xf32>
    %303 = arith.subf %299, %302 : vector<16x128xf32>
    %c0_153 = arith.constant 0 : index
    %c11 = arith.constant 11 : index
    %c0_154 = arith.constant 0 : index
    %304 = vector.load %arg3[%c0_153, %c11, %c0_154] : memref<1x16x128xf32, #tpu.memory_space<vmem>>, vector<1x1x128xf32>
    %305 = vector.shape_cast %304 : vector<1x1x128xf32> to vector<1x128xf32>
    %306 = vector.broadcast %305 : vector<1x128xf32> to vector<16x128xf32>
    %307 = arith.mulf %303, %306 : vector<16x128xf32>
    %308 = arith.addf %302, %307 : vector<16x128xf32>
    %309 = arith.truncf %308 : vector<16x128xf32> to vector<16x128xbf16>
    %c0_155 = arith.constant 0 : index
    %c4_156 = arith.constant 4 : index
    %c0_157 = arith.constant 0 : index
    %c0_158 = arith.constant 0 : index
    %310 = vector.load %arg4[%c0_155, %c4_156, %c0_157, %c0_158] : memref<1x7x128x128xbf16, #tpu.memory_space<vmem>>, vector<1x1x128x128xbf16>
    %311 = vector.shape_cast %310 : vector<1x1x128x128xbf16> to vector<128x128xbf16>
    %cst_159 = arith.constant dense<0.000000e+00> : vector<16x128xf32>
    %312 = tpu.matmul %309, %311, %cst_159 {dimension_numbers = #tpu.dot_dimension_numbers<[1], [0], [0], [1], [0, 0, 1, 1], [], []>} : vector<16x128xbf16>, vector<128x128xbf16>, vector<16x128xf32> -> vector<16x128xf32>
    %cst_160 = arith.constant 0.000000e+00 : f32
    %313 = vector.broadcast %cst_160 : f32 to vector<16x128xf32>
    %314 = arith.maximumf %312, %313 : vector<16x128xf32>
    %315 = arith.mulf %314, %314 : vector<16x128xf32>
    %316 = arith.truncf %315 : vector<16x128xf32> to vector<16x128xbf16>
    %c0_161 = arith.constant 0 : index
    %c5_162 = arith.constant 5 : index
    %c0_163 = arith.constant 0 : index
    %c0_164 = arith.constant 0 : index
    %317 = vector.load %arg4[%c0_161, %c5_162, %c0_163, %c0_164] : memref<1x7x128x128xbf16, #tpu.memory_space<vmem>>, vector<1x1x128x128xbf16>
    %318 = vector.shape_cast %317 : vector<1x1x128x128xbf16> to vector<128x128xbf16>
    %cst_165 = arith.constant dense<0.000000e+00> : vector<16x128xf32>
    %319 = tpu.matmul %316, %318, %cst_165 {dimension_numbers = #tpu.dot_dimension_numbers<[1], [0], [0], [1], [0, 0, 1, 1], [], []>} : vector<16x128xbf16>, vector<128x128xbf16>, vector<16x128xf32> -> vector<16x128xf32>
    %c0_166 = arith.constant 0 : index
    %c10 = arith.constant 10 : index
    %c0_167 = arith.constant 0 : index
    %320 = vector.load %arg3[%c0_166, %c10, %c0_167] : memref<1x16x128xf32, #tpu.memory_space<vmem>>, vector<1x1x128xf32>
    %321 = vector.shape_cast %320 : vector<1x1x128xf32> to vector<1x128xf32>
    %322 = vector.broadcast %321 : vector<1x128xf32> to vector<16x128xf32>
    %323 = arith.mulf %303, %322 : vector<16x128xf32>
    %324 = arith.addf %302, %323 : vector<16x128xf32>
    %325 = arith.truncf %324 : vector<16x128xf32> to vector<16x128xbf16>
    %c0_168 = arith.constant 0 : index
    %c6_169 = arith.constant 6 : index
    %c0_170 = arith.constant 0 : index
    %c0_171 = arith.constant 0 : index
    %326 = vector.load %arg4[%c0_168, %c6_169, %c0_170, %c0_171] : memref<1x7x128x128xbf16, #tpu.memory_space<vmem>>, vector<1x1x128x128xbf16>
    %327 = vector.shape_cast %326 : vector<1x1x128x128xbf16> to vector<128x128xbf16>
    %cst_172 = arith.constant dense<0.000000e+00> : vector<16x128xf32>
    %328 = tpu.matmul %325, %327, %cst_172 {dimension_numbers = #tpu.dot_dimension_numbers<[1], [0], [0], [1], [0, 0, 1, 1], [], []>} : vector<16x128xbf16>, vector<128x128xbf16>, vector<16x128xf32> -> vector<16x128xf32>
    %329 = arith.negf %328 : vector<16x128xf32>
    %330 = math.exp %329 : vector<16x128xf32>
    %cst_173 = arith.constant 1.000000e+00 : f32
    %331 = vector.broadcast %cst_173 : f32 to vector<16x128xf32>
    %332 = arith.addf %331, %330 : vector<16x128xf32>
    %333 = arith.divf %331, %332 : vector<16x128xf32>
    %334 = arith.mulf %333, %319 : vector<16x128xf32>
    %335 = arith.addf %273, %334 : vector<16x128xf32>
    %c1_i32_174 = arith.constant 1 : i32
    %336 = arith.cmpi slt, %arg0, %c1_i32_174 : i32
    %337 = arith.extui %336 : i1 to i32
    %c0_i32_175 = arith.constant 0 : i32
    %338 = arith.cmpi ne, %337, %c0_i32_175 : i32
    scf.if %338 {
      %c0_178 = arith.constant 0 : index
      %c0_179 = arith.constant 0 : index
      %342 = vector.load %arg5[%c0_178, %c0_179] : memref<16x128xf32, #tpu.memory_space<vmem>>, vector<16x128xf32>
      tpu.vector_store %arg5[%c0_178, %c0_179], %335 {strides = array<i32>} : memref<16x128xf32, #tpu.memory_space<vmem>>, vector<16x128xf32>,
    } else {
    }
    %c1_i32_176 = arith.constant 1 : i32
    %339 = arith.cmpi eq, %arg0, %c1_i32_176 : i32
    %340 = arith.extui %339 : i1 to i32
    %c0_i32_177 = arith.constant 0 : i32
    %341 = arith.cmpi ne, %340, %c0_i32_177 : i32
    scf.if %341 {
      %c2_178 = arith.constant 2 : index
      %c0_179 = arith.constant 0 : index
      %342 = vector.load %arg2[%c2_178, %c0_179] : memref<8x128xf32, #tpu.memory_space<vmem>>, vector<1x128xf32>
      %c3_180 = arith.constant 3 : index
      %c0_181 = arith.constant 0 : index
      %343 = vector.load %arg2[%c3_180, %c0_181] : memref<8x128xf32, #tpu.memory_space<vmem>>, vector<1x128xf32>
      %cst_182 = arith.constant dense<0.000000e+00> : vector<16xf32>
      %344 = vector.multi_reduction <add>, %335, %cst_182 [1] : vector<16x128xf32> to vector<16xf32>
      %345 = vector.shape_cast %344 : vector<16xf32> to vector<16x1xf32>
      %cst_183 = arith.constant 1.280000e+02 : f32
      %346 = vector.broadcast %cst_183 : f32 to vector<16x1xf32>
      %347 = arith.divf %345, %346 : vector<16x1xf32>
      %348 = vector.broadcast %347 : vector<16x1xf32> to vector<16x128xf32>
      %349 = arith.subf %335, %348 : vector<16x128xf32>
      %350 = arith.mulf %349, %349 : vector<16x128xf32>
      %cst_184 = arith.constant dense<0.000000e+00> : vector<16xf32>
      %351 = vector.multi_reduction <add>, %350, %cst_184 [1] : vector<16x128xf32> to vector<16xf32>
      %352 = vector.shape_cast %351 : vector<16xf32> to vector<16x1xf32>
      %cst_185 = arith.constant 1.280000e+02 : f32
      %353 = vector.broadcast %cst_185 : f32 to vector<16x1xf32>
      %354 = arith.divf %352, %353 : vector<16x1xf32>
      %355 = vector.broadcast %347 : vector<16x1xf32> to vector<16x128xf32>
      %356 = arith.subf %335, %355 : vector<16x128xf32>
      %cst_186 = arith.constant 9.99999974E-6 : f32
      %357 = vector.broadcast %cst_186 : f32 to vector<16x1xf32>
      %358 = arith.addf %354, %357 : vector<16x1xf32>
      %359 = math.rsqrt %358 : vector<16x1xf32>
      %360 = vector.broadcast %359 : vector<16x1xf32> to vector<16x128xf32>
      %361 = arith.mulf %356, %360 : vector<16x128xf32>
      %362 = vector.broadcast %342 : vector<1x128xf32> to vector<16x128xf32>
      %363 = arith.mulf %361, %362 : vector<16x128xf32>
      %364 = vector.broadcast %343 : vector<1x128xf32> to vector<16x128xf32>
      %365 = arith.addf %363, %364 : vector<16x128xf32>
      %c0_187 = arith.constant 0 : index
      %c0_188 = arith.constant 0 : index
      %366 = vector.load %arg5[%c0_187, %c0_188] : memref<16x128xf32, #tpu.memory_space<vmem>>, vector<16x128xf32>
      tpu.vector_store %arg5[%c0_187, %c0_188], %365 {strides = array<i32>} : memref<16x128xf32, #tpu.memory_space<vmem>>, vector<16x128xf32>,
    } else {
    }
    return
  }
  func.func @transform_0(%arg0: i32) -> (i32, i32) {
    %c0_i32 = arith.constant 0 : i32
    %c0_i32_0 = arith.constant 0 : i32
    %c0_i32_1 = arith.constant 0 : i32
    return %c0_i32, %c0_i32_0 : i32, i32
  }
  func.func @transform_1(%arg0: i32) -> (i32, i32) {
    %c0_i32 = arith.constant 0 : i32
    %c0_i32_0 = arith.constant 0 : i32
    %c0_i32_1 = arith.constant 0 : i32
    return %c0_i32, %c0_i32_0 : i32, i32
  }
  func.func @transform_2(%arg0: i32) -> (i32, i32, i32) {
    %c0_i32 = arith.constant 0 : i32
    %c0_i32_0 = arith.constant 0 : i32
    %c0_i32_1 = arith.constant 0 : i32
    return %arg0, %c0_i32, %c0_i32_0 : i32, i32, i32
  }
  func.func @transform_3(%arg0: i32) -> (i32, i32, i32, i32) {
    %c0_i32 = arith.constant 0 : i32
    %c0_i32_0 = arith.constant 0 : i32
    %c0_i32_1 = arith.constant 0 : i32
    %c0_i32_2 = arith.constant 0 : i32
    return %arg0, %c0_i32, %c0_i32_0, %c0_i32_1 : i32, i32, i32, i32
  }
  func.func @transform_4(%arg0: i32) -> (i32, i32) {
    %c0_i32 = arith.constant 0 : i32
    %c0_i32_0 = arith.constant 0 : i32
    %c0_i32_1 = arith.constant 0 : i32
    return %c0_i32, %c0_i32_0 : i32, i32
  }
}

</mosaic_0001>

<bundles_post_ra>
// kernel: pallas_forward.1
= control target key start
LH: loop header
LB: loop body
LE: loop exit
PB: predicated region body
PF: predicated region fallthrough
CT: control target
= control target key end

     0   :  { %9 = vsyncpa [#allocation6], 0  ;;  %s2722_s0 = inlined_call_operand.vmem [shape: f32[16,128], index: 0, kind: input, shape index: {}]   ;;  %s2723_s1 = inlined_call_operand.vmem [shape: f32[8,128], index: 1, kind: input, shape index: {}]   ;;  %s2724_s2 = inlined_call_operand.vmem [shape: f32[2,16,128], index: 2, kind: input, shape index: {}]   ;;  %s2725_s3 = inlined_call_operand.hbm [shape: bf16[2,7,128,128], index: 3, kind: input, shape index: {}]   ;;  %s2726_s4 = inlined_call_operand.vmem [shape: f32[16,128], index: 4, kind: output, shape index: {}]  }
   0x1   :  { %11 = vsyncpa [#allocation6 + $0x1], 0  ;;  %s2362_s15 = smov 0   ;;  %s2364_s16 = smov 0  }
   0x2   :  { %s2366_s17 = smov 0   ;;  %s2368_s18 = smov 0  }
   0x3 LB: > { %s2381_s19 = sadd.s32 4294967295, %s2329_s18   ;;  %s2384_s20 = sadd.s32 1, %s2329_s18   ;;  %s2329_s18 = sphi %s2368_s18, %s2733_s18   ;;  %s2325_s17 = sphi %s2366_s17, %s2732_s17   ;;  %s2321_s16 = sphi %s2364_s16, %s2731_s16   ;;  %s2317_s15 = sphi %s2362_s15, %s2730_s15  }
   0x4   : > { %s89_s21 = ssub.s32 %s2329_s18, %s2384_s20  ;;  %s92_s22 = sadd.s32 1, %s2325_s17 }
   0x5   : > { %p90_p0 = scmp.eq.s32.totalorder %s89_s21, 0  ;;  %p99_p1 = scmp.ne.s32.totalorder %s2325_s17, %s2321_s16 }
   0x6   : > { %p100_p2 = scmp.eq.s32.totalorder %s2329_s18, 0  ;;  %p105_p3 = scmp.ne.s32.totalorder %s2321_s16, %s2317_s15 }
   0x7   : > { %s2394_s23 = scalar_select %p90_p0, %s2325_s17, %s92_s22  }
   0x8   : > { %p101_p4 = por %p100_p2, %p99_p1  ;;  %p106_p5 = scmp.eq.s32.totalorder %s2381_s19, 0 }
   0x9   : > { %p2113_p6 = scmp.lt.s32.totalorder %s2329_s18, 2  ;;  %s164_s25 = sand.u32 1, %s2325_s17  }
   0xa   : > { %p2398_p7 = por %p106_p5, %p105_p3  ;;  %s2104_s26 = smul.u32 448, %s164_s25 }
   0xb   : > { %s2105_s27 = smul.u32 7168, %s2329_s18  ;;  %p2404_p8 = pnand %p2113_p6, %p101_p4 }
   0xc   : > { %s168_s6 = scalar_lea.vmem [#allocation5], %s2104_s26  ;;  %s2416_s8 = scalar_lea.sflag [#allocation6], %s164_s25 }
   0xd   : > { %s2411_s5 = scalar_lea.hbm %s2725_s3, %s2105_s27  ;;  %s175_s7 = sshll.u32 %s168_s6, 4  ;;  %s2413_s7 = int_to_ptr.vmem [resolvable:$true] %s175_s7 }
   0xe   : > { %s2265_s9 = scalar_lea.hbm %s2411_s5, 7168  ;;  %p2267_p11 = pneg %p2404_p8 }
   0xf   : > { %p2266_p10 = scmp.ne.s32.totalorder %s2411_s5, %s2265_s9  ;;  %s2270_s12 = scalar_lea.hbm %s2725_s3, 14336 }
  0x10   : > { %p2271_p0 = scmp.lt.u32.totalorder %s2411_s5, %s2725_s3  ;;  %p2272_p1 = scmp.lt.u32.totalorder %s2270_s12, %s2265_s9 }
  0x11   : > { %p2268_p12 = pnand %p2267_p11, %p2266_p10  ;;  %p2274_p3 = scmp.lt.u32.totalorder %s2265_s9, %s2411_s5 }
  0x12   : > { %p2273_p2 = por %p2272_p1, %p2271_p0 }
  0x13   : > { %p2269_p13 = pneg %p2268_p12 }
  0x14   : > { %p2275_p4 = por %p2274_p3, %p2273_p2 }
  0x16   : > { %p2276_p5 = pnand %p2275_p4, %p2269_p13 }
  0x18   : > { %2279 = shalt.err (!%p2276_p5)
}
  0x19   : > { %s2280_s15 = scalar_lea.vmem %s2413_s7, 7168  ;;  %s2331_s21 = smov [#allocation5]  }
  0x1a   : > { %p2281_p6 = scmp.ne.s32.totalorder %s2413_s7, %s2280_s15  ;;  %s2285_s22 = sshll.u32 %s2331_s21, 4  ;;  %s2286_s22 = int_to_ptr.vmem [resolvable:$false] %s2285_s22 }
  0x1b   : > { %s2287_s25 = scalar_lea.vmem %s2286_s22, 14336  ;;  %p2288_p9 = scmp.lt.s32.totalorder %s2413_s7, %s2286_s22 }
  0x1c   : > { %p2283_p10 = pnand %p2281_p6, %p2267_p11  ;;  %p2289_p0 = scmp.lt.s32.totalorder %s2287_s25, %s2280_s15 }
  0x1e   : > { %p2284_p12 = pneg %p2283_p10  ;;  %p2290_p1 = por %p2289_p0, %p2288_p9 }
  0x20   : > { %p2291_p2 = pnand %p2290_p1, %p2284_p12 }
  0x22   : > { %2294 = shalt.err (!%p2291_p2)
}
  0x23   : > { %s2332_s26 = smov 64   ;;  %s2333_s27 = smov 4  }
  0x24   : > { %2112 = dma.hbm_to_vmem [thread:$0]  (!%p2404_p8), %s2411_s5, 7168, %s2413_s7, %s2416_s8, %s2332_s26, %s2332_s26, %s2333_s27  }
  0x25   : > { %p183_p11 = scmp.lt.s32.totalorder %s2329_s18, 3  ;;  %p2729_p13 = scmp.ge.s32.totalorder %s2329_s18, 1 }
  0x27   : > { %p184_p3 = pnand %p2729_p13, %p183_p11 }
  0x28   : > { %s189_s29 = sand.u32 (!%p184_p3), 1, %s2321_s16  }
  0x29   : > { %187 = sbr.rel (%p184_p3) target bundleno = 2298 (0x8fa), region = 36  ;;  %s190_s6 = scalar_lea.sflag (!%p184_p3), [#allocation6], %s189_s29 }
  0x2a   : > { %s2106_s30 = smul.u32 (!%p184_p3), 448, %s189_s29 }
  0x2c   : > { %s2448_s9 = scalar_lea.vmem (!%p184_p3), [#allocation5], %s2106_s30 }
  0x30   : > { %2312 = dma.done.wait (%p2398_p7), %s190_s6, 7168  }
  0x31   : > { %2314 = vsyncadd (%p2398_p7), %s190_s6, 4294960128  ;;  %p218_p9 = scmp.lt.s32.totalorder %s2381_s19, 1  ;;  %p1712_p8 = scmp.ne.s32.totalorder %s2381_s19, 0 }
  0x32   : > { %v228_v0 = vld [vmem:[%s2722_s0] sm:$0xff] (!%p1712_p8)  ;;  %v229_v1 = vld [vmem:[%s2722_s0 + $0x8] sm:$0xff] (!%p1712_p8) }
  0x33   : > { %s219_s28 = scalar_select %p218_p9, %s2381_s19, 1 }
  0x34   : > { %227 = sbr.rel (%p1712_p8) target bundleno = 368 (0x170), region = 44  ;;  %232 = vadd.xlane.f32.xlu0 (!%p1712_p8), %v228_v0  ;;  %v1713_v17 = vld [vmem:[%s2723_s1] ss:$0 sm:$0xff] (!%p1712_p8)  ;;  %v1714_v19 = vld [vmem:[%s2723_s1 + $0x1] ss:$0 sm:$0xff] (!%p1712_p8) }
  0x35   : > { %s1900_s5 = sshll.u32 %s219_s28, 4 }
  0x36   : > { %s2459_s8 = scalar_lea.vmem %s2724_s2, %s1900_s5 }
  0x38   : > { %234 = vadd.xlane.f32.xlu0 (!%p1712_p8), %v229_v1 }
  0xc1   : > { %v233_v2 = vpop.xlane.xlu0 %232 }
  0xc2   : > { %v237_v3 = vmul.f32 0.0078125, %v233_v2 }
  0xc4   : > { %v239_v4 = vsub.f32 %v228_v0, %v237_v3 }
  0xc5   : > { %v235_v5 = vpop.xlane.xlu0 %234 }
  0xc6   : > { %v238_v6 = vmul.f32 0.0078125, %v235_v5  ;;  %v241_v7 = vmul.f32 %v239_v4, %v239_v4 }
  0xc8   : > { %v240_v8 = vsub.f32 %v229_v1, %v238_v6  ;;  %243 = vadd.xlane.f32.xlu1 %v241_v7 }
  0xca   : > { %v242_v9 = vmul.f32 %v240_v8, %v240_v8 }
  0xcc   : > { %245 = vadd.xlane.f32.xlu1 %v242_v9 }
 0x155   : > { %v244_v10 = vpop.xlane.xlu1 %243 }
 0x156   : > { %v247_v11 = vmul.f32 0.0078125, %v244_v10 }
 0x158   : > { %v249_v12 = vadd.f32 1e-05, %v247_v11 }
 0x159   : > { %v246_v13 = vpop.xlane.xlu1 %245 }
 0x15a   : > { %2151 = vrsqrt.f32 %v249_v12  ;;  %v248_v14 = vmul.f32 0.0078125, %v246_v13 }
 0x15c   : > { %v250_v15 = vadd.f32 1e-05, %v248_v14 }
 0x15e   : > { %2153 = vrsqrt.f32 %v250_v15 }
 0x164   : > { %v2152_v16 = vpop.eup %2151 }
 0x165   : > { %v253_v18 = vmul.f32 %v2152_v16, %v239_v4 }
 0x167   : > { %v259_v20 = vmul.f32 %v1713_v17, %v253_v18 }
 0x168   : > { %v2154_v21 = vpop.eup %2153 }
 0x169   : > { %v265_v22 = vadd.f32 %v1714_v19, %v259_v20  ;;  %v254_v23 = vmul.f32 %v2154_v21, %v240_v8 }
 0x16b   : > { %267 = vst [vmem:[%s2726_s4] sm:$0xff] %v265_v22  ;;  %v260_v24 = vmul.f32 %v1713_v17, %v254_v23 }
 0x16d   : > { %v266_v25 = vadd.f32 %v1714_v19, %v260_v24 }
 0x16f   : > { %268 = vst [vmem:[%s2726_s4 + $0x8] sm:$0xff] %v266_v25 }
 0x170 PF: > { %v2155_v36 = vld [vmem:[%s2448_s9] sm:$0xff]   ;;  %v2334_v37 = vmov 0.0   ;;  %v2157_v39 = vld [vmem:[%s2448_s9 + $0x8] sm:$0xff]   ;;  %v2159_v41 = vld [vmem:[%s2448_s9 + $0x10] sm:$0xff]   ;;  %vm2335_vm0 = vmmov 0   ;;  %vm310_vm1 = vcmask 1041408  }
 0x171   : > { %1964 = vmatprep.subr.bf16.mxu0 %v2334_v37  ;;  %1984 = vmatprep.subr.bf16.mxu1 %v2334_v37  ;;  %v2156_v38 = vld [vmem:[%s2448_s9 + $0x40] sm:$0xff]   ;;  %v2158_v40 = vld [vmem:[%s2448_s9 + $0x48] sm:$0xff]   ;;  %v2160_v42 = vld [vmem:[%s2448_s9 + $0x50] sm:$0xff]   ;;  %p1894_p7 = scmp.ge.s32.totalorder %s2381_s19, 1 }
 0x172   : > { %v269_v26 = vld [vmem:[%s2726_s4] sm:$0xff]  ;;  %1965 = vmatpush3.bf16.msra.mxu0 %v2155_v36  ;;  %1985 = vmatpush3.bf16.msra.mxu1 %v2156_v38  ;;  %v2161_v43 = vld [vmem:[%s2448_s9 + $0x18] sm:$0xff]   ;;  %v2163_v45 = vld [vmem:[%s2448_s9 + $0x20] sm:$0xff]  }
 0x173   : > { %273 = vadd.xlane.f32.xlu0 %v269_v26  ;;  %1966 = vmatprep.subr.bf16.mxu0 %v2334_v37  ;;  %v2162_v44 = vld [vmem:[%s2448_s9 + $0x58] sm:$0xff]   ;;  %v2164_v46 = vld [vmem:[%s2448_s9 + $0x60] sm:$0xff]   ;;  %v2165_v47 = vld [vmem:[%s2448_s9 + $0x28] sm:$0xff]  }
 0x174   : > { %1986 = vmatprep.subr.bf16.mxu1 %v2334_v37  ;;  %v2166_v48 = vld [vmem:[%s2448_s9 + $0x68] sm:$0xff]   ;;  %1980 = vmatprep.mubr.msk.bf16.mxu0 %vm2335_vm0, %v2334_v37  ;;  %v2167_v49 = vld [vmem:[%s2448_s9 + $0x30] sm:$0xff]   ;;  %v2169_v51 = vld [vmem:[%s2448_s9 + $0x38] sm:$0xff]  }
 0x175   : > { %2000 = vmatprep.mubr.msk.bf16.mxu1 %vm2335_vm0, %v2334_v37  ;;  %v2168_v50 = vld [vmem:[%s2448_s9 + $0x70] sm:$0xff]   ;;  %v2170_v52 = vld [vmem:[%s2448_s9 + $0x78] sm:$0xff]   ;;  %v2175_v38 = vld [vmem:[%s2448_s9 + $0xa0] sm:$0xff]  }
 0x176   : > { %v270_v27 = vld [vmem:[%s2726_s4 + $0x8] sm:$0xff]  ;;  %1967 = vmatpush3.bf16.msra.mxu0 %v2157_v39  ;;  %1987 = vmatpush3.bf16.msra.mxu1 %v2158_v40  ;;  %v1715_v60 = vld [vmem:[%s2459_s8] ss:$0 sm:$0xff]  ;;  %v1716_v62 = vld [vmem:[%s2459_s8 + $0x1] ss:$0 sm:$0xff] }
 0x177   : > { %275 = vadd.xlane.f32.xlu0 %v270_v27  ;;  %1968 = vmatprep.subr.bf16.mxu0 %v2334_v37  ;;  %v1751_v7 = vld [vmem:[%s2459_s8 + $0x6] ss:$0 sm:$0xff]  ;;  %v1717_v9 = vld [vmem:[%s2459_s8 + $0x7] ss:$0 sm:$0xff]  ;;  %v1726_v11 = vld [vmem:[%s2459_s8 + $0x8] ss:$0 sm:$0xff] }
 0x178   : > { %1988 = vmatprep.subr.bf16.mxu1 %v2334_v37  ;;  %v2176_v40 = vld [vmem:[%s2448_s9 + $0xa8] sm:$0xff]  }
 0x17a   : > { %1969 = vmatpush3.bf16.msra.mxu0 %v2159_v41  ;;  %1989 = vmatpush3.bf16.msra.mxu1 %v2160_v42  ;;  %v2177_v41 = vld [vmem:[%s2448_s9 + $0xb0] sm:$0xff]   ;;  %v2178_v42 = vld [vmem:[%s2448_s9 + $0xb8] sm:$0xff]  }
 0x17b   : > { %1970 = vmatprep.subr.bf16.mxu0 %v2334_v37  ;;  %1990 = vmatprep.subr.bf16.mxu1 %v2334_v37 }
 0x17e   : > { %1971 = vmatpush3.bf16.msra.mxu0 %v2161_v43  ;;  %1991 = vmatpush3.bf16.msra.mxu1 %v2162_v44 }
 0x17f   : > { %1972 = vmatprep.subr.bf16.mxu0 %v2334_v37  ;;  %1992 = vmatprep.subr.bf16.mxu1 %v2334_v37 }
 0x182   : > { %1973 = vmatpush3.bf16.msra.mxu0 %v2163_v45  ;;  %1993 = vmatpush3.bf16.msra.mxu1 %v2164_v46  ;;  %v2179_v46 = vld [vmem:[%s2448_s9 + $0xc0] sm:$0xff]  }
 0x183   : > { %1974 = vmatprep.subr.bf16.mxu0 %v2334_v37  ;;  %1994 = vmatprep.subr.bf16.mxu1 %v2334_v37 }
 0x186   : > { %1975 = vmatpush3.bf16.msra.mxu0 %v2165_v47  ;;  %1995 = vmatpush3.bf16.msra.mxu1 %v2166_v48  ;;  %v2180_v47 = vld [vmem:[%s2448_s9 + $0xc8] sm:$0xff]   ;;  %v2181_v48 = vld [vmem:[%s2448_s9 + $0xd0] sm:$0xff]  }
 0x187   : > { %1976 = vmatprep.subr.bf16.mxu0 %v2334_v37  ;;  %1996 = vmatprep.subr.bf16.mxu1 %v2334_v37 }
 0x18a   : > { %1977 = vmatpush3.bf16.msra.mxu0 %v2167_v49  ;;  %1997 = vmatpush3.bf16.msra.mxu1 %v2168_v50  ;;  %v2182_v49 = vld [vmem:[%s2448_s9 + $0xd8] sm:$0xff]   ;;  %v2183_v50 = vld [vmem:[%s2448_s9 + $0xe0] sm:$0xff]  }
 0x18b   : > { %1978 = vmatprep.subr.bf16.mxu0 %v2334_v37  ;;  %1998 = vmatprep.subr.bf16.mxu1 %v2334_v37 }
 0x18e   : > { %1979 = vmatpush3.bf16.msra.mxu0 %v2169_v51  ;;  %1999 = vmatpush3.bf16.msra.mxu1 %v2170_v52  ;;  %v2184_v51 = vld [vmem:[%s2448_s9 + $0xe8] sm:$0xff]   ;;  %v2185_v52 = vld [vmem:[%s2448_s9 + $0xf0] sm:$0xff]  }
 0x18f   : > { %2004 = vmatprep.subr.bf16.mxu0 %v2334_v37  ;;  %2024 = vmatprep.subr.bf16.mxu1 %v2334_v37 }
 0x200   : > { %v274_v28 = vpop.xlane.xlu0 %273 }
 0x201   : > { %v278_v29 = vmul.f32 0.0078125, %v274_v28 }
 0x203   : > { %v2486_v30 = vsub.f32 %v269_v26, %v278_v29  ;;  %v2171_v26 = vld [vmem:[%s2448_s9 + $0x80] sm:$0xff]  }
 0x204   : > { %v276_v31 = vpop.xlane.xlu0 %275 }
 0x205   : > { %v279_v32 = vmul.f32 0.0078125, %v276_v31  ;;  %v282_v33 = vmul.f32 %v2486_v30, %v2486_v30  ;;  %v2172_v31 = vld [vmem:[%s2448_s9 + $0x88] sm:$0xff]  }
 0x207   : > { %v2490_v34 = vsub.f32 %v270_v27, %v279_v32  ;;  %284 = vadd.xlane.f32.xlu1 %v282_v33  ;;  %v2173_v32 = vld [vmem:[%s2448_s9 + $0x90] sm:$0xff]   ;;  %v2174_v33 = vld [vmem:[%s2448_s9 + $0x98] sm:$0xff]  }
 0x209   : > { %v283_v35 = vmul.f32 %v2490_v34, %v2490_v34 }
 0x20b   : > { %286 = vadd.xlane.f32.xlu1 %v283_v35 }
 0x294   : > { %v285_v53 = vpop.xlane.xlu1 %284 }
 0x295   : > { %v288_v54 = vmul.f32 0.0078125, %v285_v53  ;;  %v2186_v53 = vld [vmem:[%s2448_s9 + $0xf8] sm:$0xff]  }
 0x297   : > { %v290_v55 = vadd.f32 1e-05, %v288_v54  ;;  %v686_v54 = vlaneseq }
 0x298   : > { %v287_v56 = vpop.xlane.xlu1 %286 }
 0x299   : > { %2211 = vrsqrt.f32 %v290_v55  ;;  %v289_v57 = vmul.f32 0.0078125, %v287_v56  ;;  %v687_v55 = vshrl.u32 %v686_v54, 7  ;;  %v679_v56 = vld [vmem:[%s2459_s8 + $0x5] sm:$0x1] }
 0x29b   : > { %v291_v58 = vadd.f32 1e-05, %v289_v57  ;;  %v688_v57 = vsub.s32 0, %v687_v55 }
 0x29d   : > { %2213 = vrsqrt.f32 %v291_v58  ;;  %v698_v58 = vsub.f32 0.0, %v679_v56 }
 0x2a3   : > { %v2212_v59 = vpop.eup %2211 }
 0x2a4   : > { %v294_v61 = vmul.f32 %v2212_v59, %v2486_v30  ;;  %v1778_v59 = vld [vmem:[%s2459_s8 + $0x4] ss:$0 sm:$0xff] }
 0x2a6   : > { %v300_v63 = vmul.f32 %v1715_v60, %v294_v61 }
 0x2a7   : > { %v2214_v0 = vpop.eup %2213 }
 0x2a8   : > { %v295_v1 = vmul.f32 %v2214_v0, %v2490_v34  ;;  %v306_v2 = vadd.f32 %v1716_v62, %v300_v63  ;;  %v702_v0 = vrot.slane %v698_v58, %v688_v57 }
 0x2aa   : > { %v301_v3 = vmul.f32 %v1715_v60, %v295_v1  ;;  %v311_v4 = vrot.slane %v306_v2, 6  ;;  %v689_v60 = vrot.slane %v679_v56, %v688_v57 }
 0x2ac   : > { %v307_v5 = vadd.f32 %v1716_v62, %v301_v3  ;;  %v316_v6 = vsel %vm310_vm1, 0.0, %v311_v4 }
 0x2ad   : > { %v317_v8 = vsub.f32 %v306_v2, %v316_v6 }
 0x2ae   : > { %v312_v10 = vrot.slane %v307_v5, 6 }
 0x2af   : > { %v555_v12 = vmul.f32 %v1751_v7, %v317_v8  ;;  %v324_v14 = vmul.f32 %v1717_v9, %v317_v8  ;;  %v439_v16 = vmul.f32 %v1726_v11, %v317_v8 }
 0x2b0   : > { %v313_v13 = vsel %vm310_vm1, %v311_v4, %v312_v10 }
 0x2b1   : > { %v318_v15 = vsub.f32 %v307_v5, %v313_v13  ;;  %v557_v19 = vadd.f32 %v555_v12, %v316_v6  ;;  %v326_v21 = vadd.f32 %v324_v14, %v316_v6  ;;  %v441_v24 = vadd.f32 %v439_v16, %v316_v6 }
 0x2b2   : > { %v2336_v16 = vmov 1983009808  }
 0x2b3   : > { %v325_v17 = vmul.f32 %v1717_v9, %v318_v15  ;;  %v556_v18 = vmul.f32 %v1751_v7, %v318_v15  ;;  %v440_v20 = vmul.f32 %v1726_v11, %v318_v15  ;;  %v1752_v28 = vmul.f32 -1.442695, %v557_v19 }
 0x2b5   : > { %v327_v22 = vadd.f32 %v325_v17, %v313_v13  ;;  %v558_v23 = vadd.f32 %v556_v18, %v313_v13  ;;  %v442_v25 = vadd.f32 %v440_v20, %v313_v13  ;;  %v713_v17 = vunpack.c.l.s4 %v2336_v16 }
 0x2b7   : > { %v328_v27 = vpack.c.bf16 %v327_v22, %v326_v21  ;;  %v1753_v29 = vmul.f32 -1.442695, %v558_v23  ;;  %v443_v30 = vpack.c.bf16 %v442_v25, %v441_v24  ;;  %v714_v20 = vunpack.c.0.s8 %v713_v17 }
 0x2b9   : > { %1981 = vmatmul.mubr.bf16.vlgmr.msra.gmra.mrb[0].mxu0 %v328_v27  ;;  %2215 = vpow2.f32 %v1753_v29  ;;  %2001 = vmatmul.mubr.bf16.vlgmr.msra.gmra.mrb[0].mxu1 %v443_v30  ;;  %v2583_v21 = vsub.s32 %v714_v20, %v687_v55 }
 0x2ba   : > { %2005 = vmatpush3.bf16.msra.mxu0 %v2171_v26  ;;  %2020 = vmatprep.mubr.msk.bf16.mxu0 %vm2335_vm0, %v2334_v37  ;;  %2217 = vpow2.f32 %v1752_v28 }
 0x2bb   : > { %2006 = vmatprep.subr.bf16.mxu0 %v2334_v37  ;;  %2040 = vmatprep.mubr.msk.bf16.mxu1 %vm2335_vm0, %v2334_v37 }
 0x2bc   : > { %2025 = vmatpush3.bf16.msra.mxu1 %v2179_v46 }
 0x2bd   : > { %2026 = vmatprep.subr.bf16.mxu1 %v2334_v37 }
 0x2be   : > { %2007 = vmatpush3.bf16.msra.mxu0 %v2172_v31 }
 0x2bf   : > { %2008 = vmatprep.subr.bf16.mxu0 %v2334_v37 }
 0x2c0   : > { %2027 = vmatpush3.bf16.msra.mxu1 %v2180_v47 }
 0x2c1   : > { %2028 = vmatprep.subr.bf16.mxu1 %v2334_v37 }
 0x2c2   : > { %2009 = vmatpush3.bf16.msra.mxu0 %v2173_v32 }
 0x2c3   : > { %v2216_v34 = vpop.eup %2215  ;;  %2010 = vmatprep.subr.bf16.mxu0 %v2334_v37 }
 0x2c4   : > { %v2218_v35 = vpop.eup %2217  ;;  %v566_v36 = vadd.f32 1.0, %v2216_v34  ;;  %2029 = vmatpush3.bf16.msra.mxu1 %v2181_v48 }
 0x2c5   : > { %v565_v39 = vadd.f32 1.0, %v2218_v35  ;;  %2030 = vmatprep.subr.bf16.mxu1 %v2334_v37 }
 0x2c6   : > { %2011 = vmatpush3.bf16.msra.mxu0 %v2174_v33  ;;  %2219 = vrcp.f32 %v566_v36 }
 0x2c7   : > { %2012 = vmatprep.subr.bf16.mxu0 %v2334_v37  ;;  %2221 = vrcp.f32 %v565_v39 }
 0x2c8   : > { %2031 = vmatpush3.bf16.msra.mxu1 %v2182_v49 }
 0x2c9   : > { %2032 = vmatprep.subr.bf16.mxu1 %v2334_v37 }
 0x2ca   : > { %2013 = vmatpush3.bf16.msra.mxu0 %v2175_v38 }
 0x2cb   : > { %2014 = vmatprep.subr.bf16.mxu0 %v2334_v37 }
 0x2cc   : > { %2033 = vmatpush3.bf16.msra.mxu1 %v2183_v50 }
 0x2cd   : > { %2034 = vmatprep.subr.bf16.mxu1 %v2334_v37 }
 0x2ce   : > { %2015 = vmatpush3.bf16.msra.mxu0 %v2176_v40 }
 0x2cf   : > { %2016 = vmatprep.subr.bf16.mxu0 %v2334_v37 }
 0x2d0   : > { %v2220_v43 = vpop.eup %2219  ;;  %2035 = vmatpush3.bf16.msra.mxu1 %v2184_v51 }
 0x2d1   : > { %v2222_v44 = vpop.eup %2221  ;;  %2036 = vmatprep.subr.bf16.mxu1 %v2334_v37 }
 0x2d2   : > { %2017 = vmatpush3.bf16.msra.mxu0 %v2177_v41  ;;  %v571_v45 = vpack.c.bf16 %v2220_v43, %v2222_v44 }
 0x2d3   : > { %2018 = vmatprep.subr.bf16.mxu0 %v2334_v37 }
 0x2d4   : > { %2037 = vmatpush3.bf16.msra.mxu1 %v2185_v52 }
 0x2d5   : > { %2038 = vmatprep.subr.bf16.mxu1 %v2334_v37 }
 0x2d6   : > { %2019 = vmatpush3.bf16.msra.mxu0 %v2178_v42 }
 0x2d7   : > { %2044 = vmatprep.subr.bf16.mxu0 %v2334_v37 }
 0x2d8   : > { %2039 = vmatpush3.bf16.msra.mxu1 %v2186_v53 }
 0x2d9   : > { %2021 = vmatmul.mubr.bf16.vlgmr.msra.gmra.mrb[4].mxu0 %v571_v45  ;;  %2064 = vmatprep.subr.bf16.mxu1 %v2334_v37 }
 0x2da   : > { %2060 = vmatprep.mubr.msk.bf16.mxu0 %vm2335_vm0, %v2334_v37 }
 0x38c   : > { %v427_v61 = vpop.f32.mrb[0].mxu0  ;;  %v543_v62 = vpop.f32.mrb[0].mxu1 }
 0x38d   : > { %v684_v63 = vadd.f32 %v1778_v59, %v427_v61  ;;  %v1982_v1 = vpop.f32.mrb[1].mxu0  ;;  %v2002_v2 = vpop.f32.mrb[1].mxu1 }
 0x38e   : > { %v430_v3 = vpop.f32.mrb[2].mxu0  ;;  %v2581_v4 = vpop.f32.mrb[2].mxu1 }
 0x38f   : > { %v690_v5 = vmax.f32 %v684_v63, %v689_v60  ;;  %v685_v6 = vadd.f32 %v1778_v59, %v430_v3  ;;  %v1983_v7 = vpop.f32.mrb[3].mxu0  ;;  %v2003_v8 = vpop.f32.mrb[3].mxu1 }
 0x391   : > { %v692_v9 = vsub.f32 %v684_v63, %v690_v5  ;;  %v703_v10 = vsub.f32 %v702_v0, %v690_v5  ;;  %v691_v11 = vmax.f32 %v685_v6, %v689_v60 }
 0x393   : > { %v694_v12 = vmul.f32 1.442695, %v692_v9  ;;  %v705_v13 = vmul.f32 1.442695, %v703_v10  ;;  %v693_v14 = vsub.f32 %v685_v6, %v691_v11  ;;  %v704_v15 = vsub.f32 %v702_v0, %v691_v11 }
 0x395   : > { %2223 = vpow2.f32 %v694_v12  ;;  %v696_v18 = vmul.f32 1.442695, %v693_v14  ;;  %v707_v19 = vmul.f32 1.442695, %v704_v15 }
 0x396   : > { %2225 = vpow2.f32 %v705_v13 }
 0x397   : > { %2227 = vpow2.f32 %v696_v18 }
 0x398   : > { %2229 = vpow2.f32 %v707_v19 }
 0x39f   : > { %v2224_v22 = vpop.eup %2223 }
 0x3a0   : > { %v2226_v23 = vpop.eup %2225  ;;  %1783 = vst.sshfl [vmem:[#allocation3] sm:$0x3 pattern:$0x76325410] %v2224_v22  ;;  %v763_v24 = vcombine.high %v2224_v22, %v2224_v22  ;;  %v770_v25 = vrot.slane %v2224_v22, %v2583_v21  ;;  %v813_v26 = vmul.f32 %v2224_v22, %v543_v62 }
 0x3a1   : > { %v2228_v27 = vpop.eup %2227  ;;  %v711_v28 = vcombine.high %v2226_v23, %v2226_v23  ;;  %v718_v29 = vrot.slane %v2226_v23, %v2583_v21  ;;  %1779 = vst.sshfl [vmem:[#allocation2] sm:$0x3 pattern:$0x76325410] %v2226_v23 }
 0x3a2   : > { %v2230_v30 = vpop.eup %2229  ;;  %v778_v31 = vcombine.high %v770_v25, %v770_v25  ;;  %1784 = vst.sshfl [vmem:[#allocation3 + $0x4] sm:$0x3 pattern:$0x76325410] %v763_v24  ;;  %v817_v32 = vcombine.high %v813_v26, %v813_v26  ;;  %v824_v33 = vrot.slane %v813_v26, %v2583_v21  ;;  %v777_v34 = vrot.slane %v763_v24, %v2583_v21 }
 0x3a3   : > { %1787 = vst.sshfl [vmem:[#allocation4] sm:$0x3 pattern:$0x76325410] %v813_v26  ;;  %v725_v35 = vrot.slane %v711_v28, %v2583_v21  ;;  %v726_v36 = vcombine.high %v718_v29, %v718_v29  ;;  %v728_v38 = vcombine.high %v2230_v30, %v2230_v30  ;;  %v735_v39 = vrot.slane %v2230_v30, %v2583_v21 }
 0x3a4   : > { %1785 = vst.sshfl [vmem:[#allocation3 + $0x8] sm:$0x3 pattern:$0x76325410] %v2228_v27  ;;  %806 = vst [vmem:[#allocation3 + $0x2] sm:$0x3] %v778_v31  ;;  %v831_v40 = vrot.slane %v817_v32, %v2583_v21  ;;  %v832_v41 = vcombine.high %v824_v33, %v824_v33  ;;  %v779_v42 = vcombine.high %v777_v34, %v777_v34 }
 0x3a5   : > { %1780 = vst.sshfl [vmem:[#allocation2 + $0x4] sm:$0x3 pattern:$0x76325410] %v711_v28  ;;  %v780_v43 = vcombine.high %v2228_v27, %v2228_v27  ;;  %v727_v44 = vcombine.high %v725_v35, %v725_v35  ;;  %754 = vst [vmem:[#allocation2 + $0x2] sm:$0x3] %v726_v36  ;;  %v742_v45 = vrot.slane %v728_v38, %v2583_v21 }
 0x3a6   : > { %1781 = vst.sshfl [vmem:[#allocation2 + $0x8] sm:$0x3 pattern:$0x76325410] %v2230_v30  ;;  %v743_v46 = vcombine.high %v735_v39, %v735_v39  ;;  %v787_v47 = vrot.slane %v2228_v27, %v2583_v21  ;;  %v833_v48 = vcombine.high %v831_v40, %v831_v40  ;;  %860 = vst [vmem:[#allocation4 + $0x2] sm:$0x3] %v832_v41 }
 0x3a7   : > { %1788 = vst.sshfl [vmem:[#allocation4 + $0x4] sm:$0x3 pattern:$0x76325410] %v817_v32  ;;  %v794_v49 = vrot.slane %v780_v43, %v2583_v21  ;;  %808 = vst [vmem:[#allocation3 + $0x6] sm:$0x3] %v779_v42  ;;  %v814_v50 = vmul.f32 %v2228_v27, %v2581_v4  ;;  %v744_v51 = vcombine.high %v742_v45, %v742_v45 }
 0x3a8   : > { %1782 = vst.sshfl [vmem:[#allocation2 + $0xc] sm:$0x3 pattern:$0x76325410] %v728_v38  ;;  %756 = vst [vmem:[#allocation2 + $0x6] sm:$0x3] %v727_v44  ;;  %v795_v52 = vcombine.high %v787_v47, %v787_v47 }
 0x3a9   : > { %1786 = vst.sshfl [vmem:[#allocation3 + $0xc] sm:$0x3 pattern:$0x76325410] %v780_v43  ;;  %758 = vst [vmem:[#allocation2 + $0xa] sm:$0x3] %v743_v46  ;;  %v796_v54 = vcombine.high %v794_v49, %v794_v49  ;;  %v834_v55 = vcombine.high %v814_v50, %v814_v50  ;;  %v841_v56 = vrot.slane %v814_v50, %v2583_v21 }
 0x3aa   : > { %862 = vst [vmem:[#allocation4 + $0x6] sm:$0x3] %v833_v48  ;;  %v867_v53 = vld [vmem:[#allocation2] sm:$0x3]  ;;  %760 = vst [vmem:[#allocation2 + $0xe] sm:$0x3] %v744_v51 }
 0x3ab   : > { %1789 = vst.sshfl [vmem:[#allocation4 + $0x8] sm:$0x3 pattern:$0x76325410] %v814_v50  ;;  %v868_v57 = vmul.f32 0.0, %v867_v53  ;;  %v848_v60 = vrot.slane %v834_v55, %v2583_v21  ;;  %v849_v61 = vcombine.high %v841_v56, %v841_v56 }
 0x3ac   : > { %v869_v58 = vld [vmem:[#allocation4] sm:$0x3]  ;;  %810 = vst [vmem:[#allocation3 + $0xa] sm:$0x3] %v795_v52  ;;  %v871_v59 = vld [vmem:[#allocation3] sm:$0x3] }
 0x3ad   : > { %812 = vst [vmem:[#allocation3 + $0xe] sm:$0x3] %v796_v54  ;;  %1790 = vst.sshfl [vmem:[#allocation4 + $0xc] sm:$0x3 pattern:$0x76325410] %v834_v55  ;;  %v870_v62 = vadd.f32 %v869_v58, %v868_v57  ;;  %v872_v63 = vadd.f32 %v871_v59, %v868_v57  ;;  %v850_v1 = vcombine.high %v848_v60, %v848_v60 }
 0x3ae   : > { %v876_v0 = vld [vmem:[#allocation2 + $0x2] sm:$0x3]  ;;  %864 = vst [vmem:[#allocation4 + $0xa] sm:$0x3] %v849_v61  ;;  %v2598_v2 = vpop.f32.mrb[4].mxu0 }
 0x3af   : > { %873 = vst [vmem:[#allocation4] sm:$0x3] %v870_v62  ;;  %874 = vst [vmem:[#allocation3] sm:$0x3] %v872_v63  ;;  %v877_v3 = vmul.f32 %v876_v0, %v870_v62  ;;  %v879_v4 = vld [vmem:[#allocation4 + $0x2] sm:$0x3]  ;;  %v881_v5 = vmul.f32 %v876_v0, %v872_v63  ;;  %v993_v63 = vcombine.high %v2598_v2, %v2598_v2 }
 0x3b0   : > { %v883_v6 = vld [vmem:[#allocation3 + $0x2] sm:$0x3]  ;;  %866 = vst [vmem:[#allocation4 + $0xe] sm:$0x3] %v850_v1  ;;  %v2022_v7 = vpop.f32.mrb[5].mxu0 }
 0x3b1   : > { %v880_v8 = vadd.f32 %v879_v4, %v877_v3  ;;  %v884_v9 = vadd.f32 %v883_v6, %v881_v5  ;;  %v2600_v10 = vpop.f32.mrb[6].mxu0  ;;  %v888_v11 = vld [vmem:[#allocation2 + $0x4] sm:$0x3]  ;;  %v895_v16 = vld [vmem:[#allocation3 + $0x4] sm:$0x3]  ;;  %v1007_v5 = vrot.slane %v993_v63, %v2583_v21  ;;  %v2260_v63 = vld [vmem:[%s2726_s4 + $0x8] sm:$0xff] }
 0x3b2   : > { %v2023_v12 = vpop.f32.mrb[7].mxu0  ;;  %v891_v15 = vld [vmem:[#allocation4 + $0x4] sm:$0x3]  ;;  %v900_v19 = vld [vmem:[#allocation2 + $0x6] sm:$0x3] }
 0x3b3   : > { %885 = vst [vmem:[#allocation4 + $0x2] sm:$0x3] %v880_v8  ;;  %886 = vst [vmem:[#allocation3 + $0x2] sm:$0x3] %v884_v9  ;;  %v889_v13 = vmul.f32 %v888_v11, %v880_v8  ;;  %v893_v14 = vmul.f32 %v888_v11, %v884_v9  ;;  %v903_v23 = vld [vmem:[#allocation4 + $0x6] sm:$0x3]  ;;  %v1000_v8 = vrot.slane %v2598_v2, %v2583_v21 }
 0x3b4   : > { %v907_v24 = vld [vmem:[#allocation3 + $0x6] sm:$0x3]  ;;  %v912_v27 = vld [vmem:[#allocation2 + $0x8] sm:$0x3]  ;;  %v919_v31 = vld [vmem:[#allocation3 + $0x8] sm:$0x3]  ;;  %v1010_v9 = vcombine.high %v2600_v10, %v2600_v10 }
 0x3b5   : > { %v892_v17 = vadd.f32 %v891_v15, %v889_v13  ;;  %v896_v18 = vadd.f32 %v895_v16, %v893_v14  ;;  %v915_v30 = vld [vmem:[#allocation4 + $0x8] sm:$0x3]  ;;  %v924_v34 = vld [vmem:[#allocation2 + $0xa] sm:$0x3]  ;;  %v931_v39 = vld [vmem:[#allocation3 + $0xa] sm:$0x3]  ;;  %v1017_v13 = vrot.slane %v2600_v10, %v2583_v21 }
 0x3b6   : > { %v927_v38 = vld [vmem:[#allocation4 + $0xa] sm:$0x3]  ;;  %v936_v42 = vld [vmem:[#allocation2 + $0xc] sm:$0x3]  ;;  %v943_v46 = vld [vmem:[#allocation3 + $0xc] sm:$0x3] }
 0x3b7   : > { %897 = vst [vmem:[#allocation4 + $0x4] sm:$0x3] %v892_v17  ;;  %898 = vst [vmem:[#allocation3 + $0x4] sm:$0x3] %v896_v18  ;;  %v901_v20 = vmul.f32 %v900_v19, %v892_v17  ;;  %v905_v22 = vmul.f32 %v900_v19, %v896_v18  ;;  %v939_v45 = vld [vmem:[#allocation4 + $0xc] sm:$0x3] }
 0x3b8   : > { %v948_v50 = vld [vmem:[#allocation2 + $0xe] sm:$0x3]  ;;  %v955_v56 = vld [vmem:[#allocation3 + $0xe] sm:$0x3]  ;;  %v967_v59 = vld [vmem:[#allocation3] sm:$0x3] }
 0x3b9   : > { %v904_v25 = vadd.f32 %v903_v23, %v901_v20  ;;  %v908_v26 = vadd.f32 %v907_v24, %v905_v22  ;;  %v951_v55 = vld [vmem:[#allocation4 + $0xe] sm:$0x3]  ;;  %v1009_v20 = vcombine.high %v1007_v5, %v1007_v5  ;;  %v959_v24 = vld [vmem:[#allocation4] sm:$0x3] }
 0x3ba   : > { %v968_v49 = vld [vmem:[#allocation3 + $0x2] sm:$0x3]  ;;  %v960_v15 = vld [vmem:[#allocation4 + $0x2] sm:$0x3] }
 0x3bb   : > { %909 = vst [vmem:[#allocation4 + $0x6] sm:$0x3] %v904_v25  ;;  %910 = vst [vmem:[#allocation3 + $0x6] sm:$0x3] %v908_v26  ;;  %v913_v28 = vmul.f32 %v912_v27, %v904_v25  ;;  %v917_v29 = vmul.f32 %v912_v27, %v908_v26  ;;  %2231 = vrcp.f32 %v968_v49  ;;  %v1008_v25 = vcombine.high %v1000_v8, %v1000_v8 }
 0x3bc   : > { %v1024_v26 = vrot.slane %v1010_v9, %v2583_v21 }
 0x3bd   : > { %v916_v32 = vadd.f32 %v915_v30, %v913_v28  ;;  %v920_v33 = vadd.f32 %v919_v31, %v917_v29  ;;  %v1025_v30 = vcombine.high %v1017_v13, %v1017_v13 }
 0x3be   : > { %v969_v54 = vld [vmem:[#allocation3 + $0x4] sm:$0x3]  ;;  %v961_v16 = vld [vmem:[#allocation4 + $0x4] sm:$0x3] }
 0x3bf   : > { %921 = vst [vmem:[#allocation4 + $0x8] sm:$0x3] %v916_v32  ;;  %922 = vst [vmem:[#allocation3 + $0x8] sm:$0x3] %v920_v33  ;;  %v925_v35 = vmul.f32 %v924_v34, %v916_v32  ;;  %v929_v36 = vmul.f32 %v924_v34, %v920_v33 }
 0x3c1   : > { %v928_v40 = vadd.f32 %v927_v38, %v925_v35  ;;  %v932_v41 = vadd.f32 %v931_v39, %v929_v36  ;;  %v1026_v38 = vcombine.high %v1024_v26, %v1024_v26 }
 0x3c2   : > { %v970_v51 = vld [vmem:[#allocation3 + $0x6] sm:$0x3]  ;;  %v962_v7 = vld [vmem:[#allocation4 + $0x6] sm:$0x3] }
 0x3c3   : > { %933 = vst [vmem:[#allocation4 + $0xa] sm:$0x3] %v928_v40  ;;  %934 = vst [vmem:[#allocation3 + $0xa] sm:$0x3] %v932_v41  ;;  %v937_v43 = vmul.f32 %v936_v42, %v928_v40  ;;  %v941_v44 = vmul.f32 %v936_v42, %v932_v41  ;;  %2233 = vrcp.f32 %v970_v51 }
 0x3c4   : > { %2235 = vrcp.f32 %v969_v54 }
 0x3c5   : > { %v940_v47 = vadd.f32 %v939_v45, %v937_v43  ;;  %v944_v48 = vadd.f32 %v943_v46, %v941_v44  ;;  %v2232_v0 = vpop.eup %2231 }
 0x3c6   : > { %v971_v60 = vld [vmem:[#allocation3 + $0x8] sm:$0x3]  ;;  %v978_v18 = vmul.f32 %v2232_v0, %v960_v15  ;;  %v963_v2 = vld [vmem:[#allocation4 + $0x8] sm:$0x3]  ;;  %v2191_v15 = vld [vmem:[%s2448_s9 + $0x120] sm:$0xff]  }
 0x3c7   : > { %945 = vst [vmem:[#allocation4 + $0xc] sm:$0x3] %v940_v47  ;;  %946 = vst [vmem:[#allocation3 + $0xc] sm:$0x3] %v944_v48  ;;  %v949_v52 = vmul.f32 %v948_v50, %v940_v47  ;;  %v953_v53 = vmul.f32 %v948_v50, %v944_v48 }
 0x3c8   : > { %v1036_v10 = vmul.f32 %v1008_v25, %v978_v18  ;;  %v2194_v18 = vld [vmem:[%s2448_s9 + $0x138] sm:$0xff]   ;;  %v2208_v25 = vld [vmem:[%s2448_s9 + $0x168] sm:$0xff]  }
 0x3c9   : > { %v952_v57 = vadd.f32 %v951_v55, %v949_v52  ;;  %v956_v58 = vadd.f32 %v955_v56, %v953_v53  ;;  %v1807_v55 = vld [vmem:[%s2459_s8 + $0x9] ss:$0 sm:$0xff] }
 0x3ca   : > { %v972_v61 = vld [vmem:[#allocation3 + $0xa] sm:$0x3]  ;;  %v964_v17 = vld [vmem:[#allocation4 + $0xa] sm:$0x3] }
 0x3cb   : > { %957 = vst [vmem:[#allocation4 + $0xe] sm:$0x3] %v952_v57  ;;  %958 = vst [vmem:[#allocation3 + $0xe] sm:$0x3] %v956_v58  ;;  %2237 = vrcp.f32 %v972_v61 }
 0x3cc   : > { %2239 = vrcp.f32 %v967_v59 }
 0x3cd   : > { %2241 = vrcp.f32 %v971_v60  ;;  %v2234_v3 = vpop.eup %2233  ;;  %v2259_v60 = vld [vmem:[%s2726_s4] sm:$0xff] }
 0x3ce   : > { %v973_v62 = vld [vmem:[#allocation3 + $0xc] sm:$0x3]  ;;  %v2236_v4 = vpop.eup %2235  ;;  %v982_v12 = vmul.f32 %v2234_v3, %v962_v7  ;;  %v965_v31 = vld [vmem:[#allocation4 + $0xc] sm:$0x3] }
 0x3cf   : > { %2243 = vrcp.f32 %v973_v62  ;;  %v980_v19 = vmul.f32 %v2236_v4, %v961_v16  ;;  %v2192_v16 = vld [vmem:[%s2448_s9 + $0x128] sm:$0xff]  }
 0x3d0   : > { %v1038_v28 = vmul.f32 %v1009_v20, %v982_v12  ;;  %v2188_v12 = vld [vmem:[%s2448_s9 + $0x108] sm:$0xff]  }
 0x3d1   : > { %v1037_v32 = vmul.f32 %v1007_v5, %v980_v19  ;;  %v2203_v19 = vld [vmem:[%s2448_s9 + $0x140] sm:$0xff]   ;;  %v2204_v20 = vld [vmem:[%s2448_s9 + $0x148] sm:$0xff]  }
 0x3d2   : > { %v974_v1 = vld [vmem:[#allocation3 + $0xe] sm:$0x3]  ;;  %v966_v36 = vld [vmem:[#allocation4 + $0xe] sm:$0x3] }
 0x3d3   : > { %2245 = vrcp.f32 %v974_v1  ;;  %v1052_v40 = vcombine.low %v1037_v32, %v1038_v28 }
 0x3d5   : > { %v2238_v6 = vpop.eup %2237  ;;  %v1066_v47 = vrot.slane %v1052_v40, %v2583_v21 }
 0x3d6   : > { %v2240_v11 = vpop.eup %2239  ;;  %v986_v22 = vmul.f32 %v2238_v6, %v964_v17  ;;  %v2193_v17 = vld [vmem:[%s2448_s9 + $0x130] sm:$0xff]  }
 0x3d7   : > { %v2242_v14 = vpop.eup %2241  ;;  %v976_v27 = vmul.f32 %v2240_v11, %v959_v24  ;;  %v2187_v11 = vld [vmem:[%s2448_s9 + $0x100] sm:$0xff]  }
 0x3d8   : > { %v984_v29 = vmul.f32 %v2242_v14, %v963_v2  ;;  %v1040_v34 = vmul.f32 %v1025_v30, %v986_v22  ;;  %2045 = vmatpush3.bf16.msra.mxu0 %v2187_v11  ;;  %v2190_v14 = vld [vmem:[%s2448_s9 + $0x118] sm:$0xff]   ;;  %v2205_v22 = vld [vmem:[%s2448_s9 + $0x150] sm:$0xff]   ;;  %v2207_v24 = vld [vmem:[%s2448_s9 + $0x160] sm:$0xff]  }
 0x3d9   : > { %v2244_v23 = vpop.eup %2243  ;;  %v1035_v39 = vmul.f32 %v1000_v8, %v976_v27  ;;  %2046 = vmatprep.subr.bf16.mxu0 %v2334_v37 }
 0x3da   : > { %v988_v33 = vmul.f32 %v2244_v23, %v965_v31  ;;  %v1039_v42 = vmul.f32 %v1017_v13, %v984_v29  ;;  %v2189_v13 = vld [vmem:[%s2448_s9 + $0x110] sm:$0xff]   ;;  %v2206_v23 = vld [vmem:[%s2448_s9 + $0x158] sm:$0xff]  }
 0x3db   : > { %v1051_v43 = vcombine.low %v1035_v39, %v1036_v10  ;;  %v1816_v10 = vld [vmem:[%s2459_s8 + $0x2] ss:$0 sm:$0xff] }
 0x3dc   : > { %v1041_v44 = vmul.f32 %v1024_v26, %v988_v33  ;;  %v1068_v46 = vcombine.low %v1039_v42, %v1040_v34  ;;  %2047 = vmatpush3.bf16.msra.mxu0 %v2188_v12  ;;  %v1817_v34 = vld [vmem:[%s2459_s8 + $0x3] ss:$0 sm:$0xff] }
 0x3dd   : > { %v2246_v35 = vpop.eup %2245  ;;  %v1059_v49 = vrot.slane %v1051_v43, %v2583_v21  ;;  %2048 = vmatprep.subr.bf16.mxu0 %v2334_v37 }
 0x3de   : > { %v990_v41 = vmul.f32 %v2246_v35, %v966_v36  ;;  %v1076_v50 = vrot.slane %v1068_v46, %v2583_v21 }
 0x3df   : > { %v1067_v52 = vcombine.low %v1059_v49, %v1066_v47 }
 0x3e0   : > { %v1042_v45 = vmul.f32 %v1026_v38, %v990_v41  ;;  %2049 = vmatpush3.bf16.msra.mxu0 %v2189_v13 }
 0x3e1   : > { %2050 = vmatprep.subr.bf16.mxu0 %v2334_v37 }
 0x3e2   : > { %v1069_v48 = vcombine.low %v1041_v44, %v1042_v45  ;;  %v1818_v44 = vld [vmem:[%s2459_s8 + $0xb] ss:$0 sm:$0xff] }
 0x3e4   : > { %v1083_v51 = vrot.slane %v1069_v48, %v2583_v21  ;;  %2051 = vmatpush3.bf16.msra.mxu0 %v2190_v14 }
 0x3e5   : > { %2052 = vmatprep.subr.bf16.mxu0 %v2334_v37 }
 0x3e6   : > { %v1084_v53 = vcombine.low %v1076_v50, %v1083_v51 }
 0x3e8   : > { %v1087_v54 = vpack.c.bf16 %v1084_v53, %v1067_v52  ;;  %2053 = vmatpush3.bf16.msra.mxu0 %v2191_v15  ;;  %v2195_v52 = vld [vmem:[%s2448_s9 + $0x180] sm:$0xff]  }
 0x3e9   : > { %2054 = vmatprep.subr.bf16.mxu0 %v2334_v37 }
 0x3ea   : > { %2041 = vmatmul.mubr.bf16.vlgmr.msra.gmra.mrb[4].mxu1 %v1087_v54  ;;  %v2196_v54 = vld [vmem:[%s2448_s9 + $0x188] sm:$0xff]  }
 0x3eb   : > { %2080 = vmatprep.mubr.msk.bf16.mxu1 %vm2335_vm0, %v2334_v37  ;;  %2065 = vmatpush3.bf16.msra.mxu1 %v2203_v19 }
 0x3ec   : > { %2055 = vmatpush3.bf16.msra.mxu0 %v2192_v16  ;;  %2066 = vmatprep.subr.bf16.mxu1 %v2334_v37 }
 0x3ed   : > { %2056 = vmatprep.subr.bf16.mxu0 %v2334_v37 }
 0x3ef   : > { %2067 = vmatpush3.bf16.msra.mxu1 %v2204_v20 }
 0x3f0   : > { %2057 = vmatpush3.bf16.msra.mxu0 %v2193_v17  ;;  %2068 = vmatprep.subr.bf16.mxu1 %v2334_v37 }
 0x3f1   : > { %2058 = vmatprep.subr.bf16.mxu0 %v2334_v37 }
 0x3f3   : > { %2069 = vmatpush3.bf16.msra.mxu1 %v2205_v22 }
 0x3f4   : > { %2059 = vmatpush3.bf16.msra.mxu0 %v2194_v18  ;;  %2070 = vmatprep.subr.bf16.mxu1 %v2334_v37 }
 0x3f5   : > { %2084 = vmatprep.subr.bf16.mxu0 %v2334_v37 }
 0x3f7   : > { %2071 = vmatpush3.bf16.msra.mxu1 %v2206_v23 }
 0x3f8   : > { %2072 = vmatprep.subr.bf16.mxu1 %v2334_v37 }
 0x3fb   : > { %2073 = vmatpush3.bf16.msra.mxu1 %v2207_v24 }
 0x3fc   : > { %2074 = vmatprep.subr.bf16.mxu1 %v2334_v37 }
 0x3ff   : > { %2075 = vmatpush3.bf16.msra.mxu1 %v2208_v25 }
 0x400   : > { %2076 = vmatprep.subr.bf16.mxu1 %v2334_v37 }
 0x4bd   : > { %v1192_v56 = vpop.f32.mrb[4].mxu1 }
 0x4be   : > { %v1193_v57 = vadd.f32 %v1807_v55, %v1192_v56  ;;  %v2042_v58 = vpop.f32.mrb[5].mxu1  ;;  %v2198_v56 = vld [vmem:[%s2448_s9 + $0x198] sm:$0xff]  }
 0x4bf   : > { %v1195_v59 = vpop.f32.mrb[6].mxu1  ;;  %v2200_v58 = vld [vmem:[%s2448_s9 + $0x1a8] sm:$0xff]  }
 0x4c0   : > { %v2622_v61 = vadd.f32 %v2259_v60, %v1193_v57  ;;  %v1196_v62 = vadd.f32 %v1807_v55, %v1195_v59  ;;  %v2043_v21 = vpop.f32.mrb[7].mxu1  ;;  %v2197_v55 = vld [vmem:[%s2448_s9 + $0x190] sm:$0xff]   ;;  %v2199_v57 = vld [vmem:[%s2448_s9 + $0x1a0] sm:$0xff]   ;;  %v1867_v60 = vld [vmem:[%s2459_s8 + $0xa] ss:$0 sm:$0xff] }
 0x4c1   : > { %v2201_v59 = vld [vmem:[%s2448_s9 + $0x1b0] sm:$0xff]  }
 0x4c2   : > { %v2627_v0 = vadd.f32 %v2260_v63, %v1196_v62  ;;  %1203 = vadd.xlane.f32.xlu0 %v2622_v61  ;;  %v2202_v63 = vld [vmem:[%s2448_s9 + $0x1b8] sm:$0xff]  }
 0x4c4   : > { %1205 = vadd.xlane.f32.xlu1 %v2627_v0 }
 0x54f   : > { %v1204_v1 = vpop.xlane.xlu0 %1203 }
 0x550   : > { %v1207_v3 = vmul.f32 0.0078125, %v1204_v1 }
 0x551   : > { %v1206_v4 = vpop.xlane.xlu1 %1205 }
 0x552   : > { %v1209_v5 = vsub.f32 %v2622_v61, %v1207_v3  ;;  %v1208_v6 = vmul.f32 0.0078125, %v1206_v4 }
 0x554   : > { %v1210_v7 = vsub.f32 %v2627_v0, %v1208_v6  ;;  %v1211_v8 = vmul.f32 %v1209_v5, %v1209_v5  ;;  %v2210_v6 = vld [vmem:[%s2448_s9 + $0x178] sm:$0xff]  }
 0x556   : > { %1213 = vadd.xlane.f32.xlu0 %v1211_v8  ;;  %v1212_v9 = vmul.f32 %v1210_v7, %v1210_v7 }
 0x558   : > { %1215 = vadd.xlane.f32.xlu1 %v1212_v9 }
 0x5e3   : > { %v1214_v2 = vpop.xlane.xlu0 %1213 }
 0x5e4   : > { %v1217_v26 = vmul.f32 0.0078125, %v1214_v2 }
 0x5e5   : > { %v1216_v27 = vpop.xlane.xlu1 %1215 }
 0x5e6   : > { %v1219_v28 = vadd.f32 1e-05, %v1217_v26  ;;  %v1218_v29 = vmul.f32 0.0078125, %v1216_v27 }
 0x5e8   : > { %2247 = vrsqrt.f32 %v1219_v28  ;;  %v1220_v30 = vadd.f32 1e-05, %v1218_v29 }
 0x5ea   : > { %2249 = vrsqrt.f32 %v1220_v30 }
 0x5f2   : > { %v2248_v31 = vpop.eup %2247 }
 0x5f3   : > { %v1223_v32 = vmul.f32 %v2248_v31, %v1209_v5  ;;  %v2209_v5 = vld [vmem:[%s2448_s9 + $0x170] sm:$0xff]  }
 0x5f4   : > { %v2250_v33 = vpop.eup %2249  ;;  %2077 = vmatpush3.bf16.msra.mxu1 %v2209_v5 }
 0x5f5   : > { %v1229_v35 = vmul.f32 %v1816_v10, %v1223_v32  ;;  %v1224_v36 = vmul.f32 %v2250_v33, %v1210_v7  ;;  %2078 = vmatprep.subr.bf16.mxu1 %v2334_v37 }
 0x5f7   : > { %v1230_v38 = vmul.f32 %v1816_v10, %v1224_v36  ;;  %v1235_v39 = vadd.f32 %v1817_v34, %v1229_v35 }
 0x5f8   : > { %2079 = vmatpush3.bf16.msra.mxu1 %v2210_v6 }
 0x5f9   : > { %v1236_v40 = vadd.f32 %v1817_v34, %v1230_v38  ;;  %v1239_v41 = vrot.slane %v1235_v39, 6 }
 0x5fb   : > { %v1240_v42 = vrot.slane %v1236_v40, 6  ;;  %v1244_v43 = vsel %vm310_vm1, 0.0, %v1239_v41 }
 0x5fc   : > { %v1245_v45 = vsub.f32 %v1235_v39, %v1244_v43 }
 0x5fd   : > { %v1241_v46 = vsel %vm310_vm1, %v1239_v41, %v1240_v42 }
 0x5fe   : > { %v1246_v47 = vsub.f32 %v1236_v40, %v1241_v46  ;;  %v1252_v48 = vmul.f32 %v1818_v44, %v1245_v45  ;;  %v1479_v21 = vmul.f32 %v1867_v60, %v1245_v45 }
 0x600   : > { %v1253_v49 = vmul.f32 %v1818_v44, %v1246_v47  ;;  %v1254_v50 = vadd.f32 %v1252_v48, %v1244_v43  ;;  %v1480_v62 = vmul.f32 %v1867_v60, %v1246_v47  ;;  %v1481_v3 = vadd.f32 %v1479_v21, %v1244_v43 }
 0x602   : > { %v1255_v51 = vadd.f32 %v1253_v49, %v1241_v46  ;;  %v1482_v1 = vadd.f32 %v1480_v62, %v1241_v46 }
 0x604   : > { %v1256_v53 = vpack.c.bf16 %v1255_v51, %v1254_v50  ;;  %v1483_v4 = vpack.c.bf16 %v1482_v1, %v1481_v3 }
 0x606   : > { %2061 = vmatmul.mubr.bf16.vlgmr.msra.gmra.mrb[8].mxu0 %v1256_v53 }
 0x607   : > { %2085 = vmatpush3.bf16.msra.mxu0 %v2195_v52  ;;  %2100 = vmatprep.mubr.msk.bf16.mxu0 %vm2335_vm0, %v2334_v37 }
 0x608   : > { %2086 = vmatprep.subr.bf16.mxu0 %v2334_v37 }
 0x60b   : > { %2087 = vmatpush3.bf16.msra.mxu0 %v2196_v54 }
 0x60c   : > { %2088 = vmatprep.subr.bf16.mxu0 %v2334_v37 }
 0x60f   : > { %2089 = vmatpush3.bf16.msra.mxu0 %v2197_v55 }
 0x610   : > { %2090 = vmatprep.subr.bf16.mxu0 %v2334_v37 }
 0x613   : > { %2091 = vmatpush3.bf16.msra.mxu0 %v2198_v56 }
 0x614   : > { %2092 = vmatprep.subr.bf16.mxu0 %v2334_v37 }
 0x617   : > { %2093 = vmatpush3.bf16.msra.mxu0 %v2199_v57 }
 0x618   : > { %2094 = vmatprep.subr.bf16.mxu0 %v2334_v37 }
 0x61b   : > { %2095 = vmatpush3.bf16.msra.mxu0 %v2200_v58 }
 0x61c   : > { %2096 = vmatprep.subr.bf16.mxu0 %v2334_v37 }
 0x61f   : > { %2097 = vmatpush3.bf16.msra.mxu0 %v2201_v59 }
 0x620   : > { %2098 = vmatprep.subr.bf16.mxu0 %v2334_v37 }
 0x623   : > { %2099 = vmatpush3.bf16.msra.mxu0 %v2202_v63 }
 0x626   : > { %2101 = vmatmul.mubr.bf16.vlgmr.msra.gmra.mrb[12].mxu0 %v1483_v4 }
 0x6d9   : > { %v1356_v7 = vpop.f32.mrb[8].mxu0 }
 0x6da   : > { %v1363_v8 = vmax.f32 %v1356_v7, 0.0  ;;  %v2062_v9 = vpop.f32.mrb[9].mxu0 }
 0x6db   : > { %v1359_v11 = vpop.f32.mrb[10].mxu0 }
 0x6dc   : > { %v1364_v12 = vmax.f32 %v1359_v11, 0.0  ;;  %v2063_v13 = vpop.f32.mrb[11].mxu0  ;;  %v1365_v14 = vmul.f32 %v1363_v8, %v1363_v8 }
 0x6de   : > { %v1366_v15 = vmul.f32 %v1364_v12, %v1364_v12 }
 0x6e0   : > { %v1367_v16 = vpack.c.bf16 %v1366_v15, %v1365_v14 }
 0x6e2   : > { %2081 = vmatmul.mubr.bf16.vlgmr.msra.gmra.mrb[8].mxu1 %v1367_v16 }
 0x6f9   : > { %v1583_v17 = vpop.f32.mrb[12].mxu0 }
 0x6fa   : > { %v2102_v18 = vpop.f32.mrb[13].mxu0  ;;  %v1892_v22 = vmul.f32 -1.442695, %v1583_v17 }
 0x6fb   : > { %v1586_v19 = vpop.f32.mrb[14].mxu0 }
 0x6fc   : > { %v2103_v20 = vpop.f32.mrb[15].mxu0  ;;  %v1893_v23 = vmul.f32 -1.442695, %v1586_v19  ;;  %2251 = vpow2.f32 %v1892_v22 }
 0x6fe   : > { %2253 = vpow2.f32 %v1893_v23 }
 0x706   : > { %v2252_v37 = vpop.eup %2251 }
 0x707   : > { %v1596_v25 = vadd.f32 1.0, %v2252_v37 }
 0x708   : > { %v2254_v24 = vpop.eup %2253 }
 0x709   : > { %v1597_v2 = vadd.f32 1.0, %v2254_v24  ;;  %2255 = vrcp.f32 %v1596_v25 }
 0x70b   : > { %2257 = vrcp.f32 %v1597_v2 }
 0x713   : > { %v2256_v26 = vpop.eup %2255 }
 0x715   : > { %v2258_v30 = vpop.eup %2257 }
 0x7b4   : > { %1609 = sbr.rel (%p1894_p7) target bundleno = 1981 (0x7bd), region = 48 }
 0x7b5   : > { %v1467_v27 = vpop.f32.mrb[8].mxu1 }
 0x7b6   : > { %v1602_v28 = vmul.f32 %v2256_v26, %v1467_v27  ;;  %v2082_v29 = vpop.f32.mrb[9].mxu1 }
 0x7b7   : > { %v1470_v31 = vpop.f32.mrb[10].mxu1 }
 0x7b8   : > { %v1604_v10 = vadd.f32 %v1602_v28, %v2622_v61  ;;  %v1603_v32 = vmul.f32 %v2258_v30, %v1470_v31  ;;  %v2083_v33 = vpop.f32.mrb[11].mxu1 }
 0x7ba   : > { %v1605_v34 = vadd.f32 %v1603_v32, %v2627_v0  ;;  %1610 = vst [vmem:[%s2726_s4] sm:$0xff] (!%p1894_p7), %v1604_v10 }
 0x7bc   : > { %1611 = vst [vmem:[%s2726_s4 + $0x8] sm:$0xff] %v1605_v34 }
 0x7bd PF: > { %p1895_p4 = scmp.ne.s32.totalorder %s2381_s19, 1 }
 0x7be   : > { %1618 = vadd.xlane.f32.xlu0 (!%p1895_p4), %v1604_v10  ;;  %v1896_v49 = vld [vmem:[%s2723_s1 + $0x2] ss:$0 sm:$0xff] (!%p1895_p4)  ;;  %v1897_v51 = vld [vmem:[%s2723_s1 + $0x3] ss:$0 sm:$0xff] (!%p1895_p4) }
 0x7bf   : > { %1615 = sbr.rel (%p1895_p4) target bundleno = 2298 (0x8fa), region = 52 }
 0x7c2   : > { %1620 = vadd.xlane.f32.xlu0 (!%p1895_p4), %v1605_v34 }
 0x84b   : > { %v1619_v61 = vpop.xlane.xlu0 %1618 }
 0x84c   : > { %v1622_v35 = vmul.f32 0.0078125, %v1619_v61 }
 0x84e   : > { %v1624_v0 = vsub.f32 %v1604_v10, %v1622_v35 }
 0x84f   : > { %v1621_v36 = vpop.xlane.xlu0 %1620 }
 0x850   : > { %v1623_v38 = vmul.f32 0.0078125, %v1621_v36  ;;  %v1626_v39 = vmul.f32 %v1624_v0, %v1624_v0 }
 0x852   : > { %v1625_v40 = vsub.f32 %v1605_v34, %v1623_v38  ;;  %1628 = vadd.xlane.f32.xlu1 %v1626_v39 }
 0x854   : > { %v1627_v41 = vmul.f32 %v1625_v40, %v1625_v40 }
 0x856   : > { %1630 = vadd.xlane.f32.xlu1 %v1627_v41 }
 0x8df   : > { %v1629_v42 = vpop.xlane.xlu1 %1628 }
 0x8e0   : > { %v1632_v43 = vmul.f32 0.0078125, %v1629_v42 }
 0x8e2   : > { %v1634_v44 = vadd.f32 1e-05, %v1632_v43 }
 0x8e3   : > { %v1631_v45 = vpop.xlane.xlu1 %1630 }
 0x8e4   : > { %2261 = vrsqrt.f32 %v1634_v44  ;;  %v1633_v46 = vmul.f32 0.0078125, %v1631_v45 }
 0x8e6   : > { %v1635_v47 = vadd.f32 1e-05, %v1633_v46 }
 0x8e8   : > { %2263 = vrsqrt.f32 %v1635_v47 }
 0x8ee   : > { %v2262_v48 = vpop.eup %2261 }
 0x8ef   : > { %v1638_v50 = vmul.f32 %v2262_v48, %v1624_v0 }
 0x8f1   : > { %v1644_v52 = vmul.f32 %v1896_v49, %v1638_v50 }
 0x8f2   : > { %v2264_v53 = vpop.eup %2263 }
 0x8f3   : > { %v1650_v54 = vadd.f32 %v1897_v51, %v1644_v52  ;;  %v1639_v55 = vmul.f32 %v2264_v53, %v1625_v40 }
 0x8f5   : > { %1652 = vst [vmem:[%s2726_s4] sm:$0xff] %v1650_v54  ;;  %v1645_v56 = vmul.f32 %v1896_v49, %v1639_v55 }
 0x8f7   : > { %v1651_v57 = vadd.f32 %v1897_v51, %v1645_v56 }
 0x8f9   : > { %1653 = vst [vmem:[%s2726_s4 + $0x8] sm:$0xff] %v1651_v57 }
 0x8fa PF: > { %p14_p5 = scmp.ge.s32.totalorder %s2384_s20, 4   ;;  %s2730_s15 = smov %s2321_s16 }
 0x8fb   : > { %s2731_s16 = smov %s2325_s17  ;;  %s2732_s17 = smov %s2394_s23 }
 0x8fc   : > { %s2733_s18 = smov %s2384_s20  ;;  %16 = sbr.rel (!%p14_p5) target bundleno = 3 (0x3), region = 114 }
 0x903   :  { %1665 = vsyncpa [#allocation6], 1 }
 0x904   :  { %1667 = vsyncpa [#allocation6 + $0x1], 1 }

</bundles_post_ra>
